<compile_context>
chip_gen: v6e
topology: v6e:2x2x1
jax: 0.10.0
libtpu: 0.0.40
codegen_flags: <defaults>
</compile_context>

<pallas_src>
import functools

import numpy as np
import jax
import jax.numpy as jnp
from jax.experimental import pallas as pl
from jax.experimental.pallas import tpu as pltpu

PRIMITIVES_BINARY = ["plus", "multiply", "max", "min", "concat"]
NUM_PRIM = len(PRIMITIVES_BINARY)

COLUMNS = [
    "cap-shape", "cap-surface", "cap-color", "bruises", "odor",
    "gill-attachment", "gill-spacing", "gill-size", "gill-color",
    "stalk-shape", "stalk-root", "stalk-surface-above-ring",
    "stalk-surface-below-ring", "stalk-color-above-ring",
    "stalk-color-below-ring", "veil-type", "veil-color", "ring-number",
    "ring-type", "spore-print-color", "population", "habitat",
]
NUM_COLS = len(COLUMNS)                      # 22
NUM_PAIRS = NUM_COLS * (NUM_COLS - 1) // 2   # 231
I1, I2 = np.triu_indices(NUM_COLS, k=1)      # static pair index lists

LANE = 128                                   # b*D lane budget (B*D <= 128)
C_PAD = ((NUM_COLS + 7) // 8) * 8            # 24
NP_PAD = ((NUM_PAIRS + 7) // 8) * 8          # 232


def _stable_softplus(x):
    # log(1 + exp(x)) without overflow; exp argument is always <= 0.
    return jnp.maximum(x, 0.0) + jnp.log(1.0 + jnp.exp(-jnp.abs(x)))


# --------------------------------------------------------------------------
# Pallas kernel: single grid step.
#   * column-level reparam + tanh-MLP on (C_PAD, 128) lane-dense slabs
#   * pair expansion via two small 0/1 MXU matmuls
#   * primitive select + per-pair linear heads folded into one big reduction
# --------------------------------------------------------------------------
def _nasp_kernel(trans,
                 sel_ref,      # SMEM (1,)   int32  argmax(log_alpha)
                 mlp_ref,      # SMEM (2,32) f32    mlp_p / mlp_q params
                 mean_ref,     # VMEM (C_PAD, LANE) per-column emb means
                 std_ref,      # VMEM (C_PAD, LANE) per-column emb stds (raw)
                 v_ref,        # VMEM (1, LANE)     reparam noise row
                 e1_ref,       # VMEM (NP_PAD, C_PAD) 0/1 expansion (first col)
                 e2_ref,       # VMEM (NP_PAD, C_PAD) 0/1 expansion (second col)
                 wa_ref,       # VMEM (2, NP_PAD, LANE) selected head weights
                 wb_ref,       # VMEM (2, NP_PAD, LANE) concat-q head (else 0)
                 g_ref,        # VMEM (LANE, B)     lane-block -> batch selector
                 label_ref,    # VMEM (2, B)        label^T
                 posw_ref,     # VMEM (2, B)        pos_weights^T
                 inf_ref,      # out  (2, B)        inferences^T
                 loss_ref):    # out  (1, 1)        weighted loss
    # ---- reparameterize at COLUMN granularity (22 unique columns) ----------
    # emb = mean + softplus(std_raw) * v * 0.01   (noise row broadcast)
    emb = mean_ref[...] + _stable_softplus(std_ref[...]) * v_ref[...] * 0.01

    if trans:
        # per-element MLP: Linear(1,8) -> Tanh -> Linear(8,1), unrolled over
        # the 8 hidden units as lane-dense elementwise VPU/EUP work.
        def apply_mlp(x, row):
            out = jnp.full_like(x, mlp_ref[row, 24])          # output bias
            for k in range(8):
                out = out + mlp_ref[row, 16 + k] * jnp.tanh(
                    x * mlp_ref[row, k] + mlp_ref[row, 8 + k])
            return out

        p_cols = apply_mlp(emb, 0)                            # mlp_p
        q_cols = apply_mlp(emb, 1)                            # mlp_q
    else:
        p_cols = emb
        q_cols = emb

    # ---- expand columns -> pairs on the (idle) MXU --------------------------
    # pexp[pair, b*D+d] = p_cols[i1[pair], b*D+d]   (E rows are one-hot)
    pexp = jnp.dot(e1_ref[...], p_cols, preferred_element_type=jnp.float32)
    qexp = jnp.dot(e2_ref[...], q_cols, preferred_element_type=jnp.float32)

    # ---- select primitive (one-hot arch weights -> argmax index) ------------
    sel = sel_ref[0]
    a = pexp + qexp                                           # 'plus' (default)
    a = jnp.where(sel == 1, pexp * qexp, a)                   # 'multiply'
    a = jnp.where(sel == 2, jnp.maximum(pexp, qexp), a)       # 'max'
    a = jnp.where(sel == 3, jnp.minimum(pexp, qexp), a)       # 'min'
    a = jnp.where(sel == 4, pexp, a)                          # 'concat' p-half

    # ---- per-pair linear heads + sum over pairs ------------------------------
    # wb is all-zero unless sel == 4 (concat), where it carries the q-half.
    z0 = a * wa_ref[0] + qexp * wb_ref[0]                     # (NP_PAD, LANE)
    z1 = a * wa_ref[1] + qexp * wb_ref[1]
    col = jnp.concatenate(
        [jnp.sum(z0, axis=0, keepdims=True),
         jnp.sum(z1, axis=0, keepdims=True)], axis=0)         # (2, LANE)
    # fold the per-batch 16-lane blocks with a tiny 0/1 matmul -> (2, B)
    inf_t = jnp.dot(col, g_ref[...], preferred_element_type=jnp.float32)
    inf_ref[...] = inf_t

    # weighted loss = mean_b sum_o pos_w * (inf - label)^2
    n_batch = label_ref.shape[1]
    err = (inf_t - label_ref[...]) ** 2
    wl = jnp.sum(posw_ref[...] * err) / n_batch
    loss_ref[...] = jnp.reshape(wl, (1, 1))


# --------------------------------------------------------------------------
# Wrapper (glue: embedding gather, column-slab packing, head-weight select).
# --------------------------------------------------------------------------
def nasp_v_forward(params, feat_idx, label, pos_weights, *, trans=True):
    emb_mean = params["emb_mean"]            # (C, N, D)
    emb_std = params["emb_std"]              # (C, N, D)
    C, _, D = emb_mean.shape
    B = feat_idx.shape[1]
    BD = B * D
    assert C == NUM_COLS
    assert BD <= LANE, "batch*dim must fit in one lane row"
    assert BD <= params["rand_array"].shape[0], "rand_array too small"

    # ---- gather per-column embeddings into lane-dense (C_PAD, LANE) slabs
    col = jnp.arange(C)[:, None]
    gm = emb_mean[col, feat_idx]              # (C, B, D)
    gs = emb_std[col, feat_idx]               # (C, B, D)

    def to_col_slab(x):                       # (C, B, D) -> (C_PAD, LANE)
        x = x.reshape(C, BD)
        return jnp.pad(x, ((0, C_PAD - C), (0, LANE - BD)))

    mean_cols = to_col_slab(gm)
    std_cols = to_col_slab(gs)

    # same noise for every pair / column (matches rand_array[:B*D] semantics)
    v_row = jnp.pad(params["rand_array"][:BD].reshape(1, BD),
                    ((0, 0), (0, LANE - BD)))

    # ---- static 0/1 pair-expansion matrices and lane-block selector
    e1 = np.zeros((NP_PAD, C_PAD), np.float32)
    e2 = np.zeros((NP_PAD, C_PAD), np.float32)
    e1[np.arange(NUM_PAIRS), I1] = 1.0
    e2[np.arange(NUM_PAIRS), I2] = 1.0
    g = np.zeros((LANE, B), np.float32)
    g[np.arange(BD), np.arange(BD) // D] = 1.0
    e1, e2, g = jnp.asarray(e1), jnp.asarray(e2), jnp.asarray(g)

    # ---- one-hot arch weights: only the argmax primitive matters
    sel = jnp.argmax(params["log_alpha"]).astype(jnp.int32)

    # head weights packed as (out_col, pair, d); select the active primitive.
    w4 = jnp.transpose(params["fc_w4"], (1, 3, 0, 2))         # (4, 2, NP, D)
    wcat = params["fc_wcat"]                                  # (NP, 2D, 2)
    wcat_p = jnp.transpose(wcat[:, :D, :], (2, 0, 1))         # (2, NP, D)
    wcat_q = jnp.transpose(wcat[:, D:, :], (2, 0, 1))         # (2, NP, D)

    w4_sel = jax.lax.dynamic_index_in_dim(w4, jnp.minimum(sel, 3),
                                          axis=0, keepdims=False)
    wa_small = jnp.where(sel == 4, wcat_p, w4_sel)            # (2, NP, D)
    wb_small = jnp.where(sel == 4, wcat_q, jnp.zeros_like(wcat_q))

    def to_head_slab(w):                      # (2, NP, D) -> (2, NP_PAD, LANE)
        w = jnp.broadcast_to(w[:, :, None, :], (2, NUM_PAIRS, B, D))
        w = w.reshape(2, NUM_PAIRS, BD)
        return jnp.pad(w, ((0, 0), (0, NP_PAD - NUM_PAIRS), (0, LANE - BD)))

    wa = to_head_slab(wa_small)
    wb = to_head_slab(wb_small)

    label_t = jnp.transpose(label).astype(jnp.float32)        # (2, B)
    posw_t = jnp.transpose(pos_weights).astype(jnp.float32)   # (2, B)
    sel_arr = sel.reshape(1)

    kernel = functools.partial(_nasp_kernel, trans)

    grid_spec = pltpu.PrefetchScalarGridSpec(
        num_scalar_prefetch=0,
        grid=(1,),
        in_specs=[
            pl.BlockSpec(memory_space=pltpu.MemorySpace.SMEM),     # sel
            pl.BlockSpec(memory_space=pltpu.MemorySpace.SMEM),     # mlp params
            pl.BlockSpec((C_PAD, LANE), lambda i: (0, 0)),         # mean cols
            pl.BlockSpec((C_PAD, LANE), lambda i: (0, 0)),         # std cols
            pl.BlockSpec((1, LANE), lambda i: (0, 0)),             # noise row
            pl.BlockSpec((NP_PAD, C_PAD), lambda i: (0, 0)),       # E1
            pl.BlockSpec((NP_PAD, C_PAD), lambda i: (0, 0)),       # E2
            pl.BlockSpec((2, NP_PAD, LANE), lambda i: (0, 0, 0)),  # Wa
            pl.BlockSpec((2, NP_PAD, LANE), lambda i: (0, 0, 0)),  # Wb
            pl.BlockSpec((LANE, B), lambda i: (0, 0)),             # G
            pl.BlockSpec((2, B), lambda i: (0, 0)),                # label^T
            pl.BlockSpec((2, B), lambda i: (0, 0)),                # pos_w^T
        ],
        out_specs=[
            pl.BlockSpec((2, B), lambda i: (0, 0)),                # inf^T
            pl.BlockSpec((1, 1), lambda i: (0, 0)),                # weighted loss
        ],
    )

    inf_t, wloss = pl.pallas_call(
        kernel,
        out_shape=(jax.ShapeDtypeStruct((2, B), jnp.float32),
                   jax.ShapeDtypeStruct((1, 1), jnp.float32)),
        grid_spec=grid_spec,
        compiler_params=pltpu.CompilerParams(
            dimension_semantics=("arbitrary",)),
    )(sel_arr, params["mlp"], mean_cols, std_cols, v_row, e1, e2,
      wa, wb, g, label_t, posw_t)

    # forward() returns (inferences, weighted_loss, 0)
    return jnp.transpose(inf_t), wloss[0, 0], 0.0


# --------------------------------------------------------------------------
# Pure-JAX reference (computes all 5 branches weighted by the one-hot).
# --------------------------------------------------------------------------
def reference_forward(params, feat_idx, label, pos_weights, *, trans=True):
    emb_mean = params["emb_mean"]
    emb_std = params["emb_std"]
    C, _, D = emb_mean.shape
    B = feat_idx.shape[1]
    i1, i2 = np.triu_indices(C, k=1)

    col = jnp.arange(C)[:, None]
    gm = emb_mean[col, feat_idx]
    gs = emb_std[col, feat_idx]
    v = params["rand_array"][: B * D].reshape(B, D)

    P = gm[i1] + _stable_softplus(gs[i1]) * v * 0.01
    Q = gm[i2] + _stable_softplus(gs[i2]) * v * 0.01

    if trans:
        mlp = params["mlp"]

        def apply_mlp(x, row):
            out = jnp.full_like(x, mlp[row, 24])
            for k in range(8):
                out = out + mlp[row, 16 + k] * jnp.tanh(
                    x * mlp[row, k] + mlp[row, 8 + k])
            return out

        P = apply_mlp(P, 0)
        Q = apply_mlp(Q, 1)

    ops4 = jnp.stack([P + Q, P * Q, jnp.maximum(P, Q), jnp.minimum(P, Q)],
                     axis=1)                                   # (NP,4,B,D)
    r4 = jnp.einsum("nkbd,nkde->nkbe", ops4, params["fc_w4"])  # (NP,4,B,2)
    rcat = jnp.einsum("nbd,nde->nbe",
                      jnp.concatenate([P, Q], axis=-1),
                      params["fc_wcat"])                       # (NP,B,2)
    wts = jax.nn.one_hot(
        jnp.argmax(params["log_alpha"], axis=-1), NUM_PRIM,
        dtype=jnp.float32).reshape(-1)
    inf = (jnp.sum(wts[None, :4, None, None] * r4, axis=(0, 1))
           + wts[4] * jnp.sum(rcat, axis=0))
    loss = (inf - label) ** 2
    wl = jnp.mean(jnp.sum(pos_weights * loss, axis=1))
    return inf, wl


# --------------------------------------------------------------------------
if __name__ == "__main__":
    key = jax.random.PRNGKey(0)
    B, D, EMB_NUM = 8, 16, 12
    keys = jax.random.split(key, 12)

    def make_mlp_row(k):
        ks = jax.random.split(k, 4)
        w1 = jax.random.normal(ks[0], (8,)) * 0.5     # Linear(1, 8).weight
        b1 = jax.random.normal(ks[1], (8,)) * 0.1     # Linear(1, 8).bias
        w2 = jax.random.normal(ks[2], (8,)) * 0.5     # Linear(8, 1).weight
        b2 = jax.random.normal(ks[3], (1,)) * 0.1     # Linear(8, 1).bias
        return jnp.concatenate([w1, b1, w2, b2, jnp.zeros((7,))]).astype(jnp.float32)

    params = {
        "emb_mean": jax.random.normal(keys[0], (NUM_COLS, EMB_NUM, D), jnp.float32),
        "emb_std": jax.random.normal(keys[1], (NUM_COLS, EMB_NUM, D), jnp.float32) * 0.5,
        # FC heads already stored transposed (in_dim, 2) for x @ W.
        "fc_w4": jax.random.normal(keys[2], (NUM_PAIRS, 4, D, 2), jnp.float32)
                 * (1.0 / np.sqrt(D)),
        "fc_wcat": jax.random.normal(keys[3], (NUM_PAIRS, 2 * D, 2), jnp.float32)
                   * (1.0 / np.sqrt(2 * D)),
        "log_alpha": 1.0 + 0.01 * jax.random.normal(keys[4], (1, NUM_PRIM), jnp.float32),
        "mlp": jnp.stack([make_mlp_row(keys[5]), make_mlp_row(keys[6])]),
        "rand_array": jax.random.normal(keys[7], (4096,), jnp.float32),
    }

    feat_idx = jax.random.randint(keys[8], (NUM_COLS, B), 0, EMB_NUM).astype(jnp.int32)
    label = jax.nn.one_hot(jax.random.randint(keys[9], (B,), 0, 2), 2, dtype=jnp.float32)
    pos_weights = jax.nn.one_hot(jax.random.randint(keys[10], (B,), 0, 2), 2,
                                 dtype=jnp.float32)

    # Validate the natural argmax plus every forced primitive branch
    # (including 'concat'), exercising the primitive selection path.
    test_alphas = [params["log_alpha"]]
    for s in range(NUM_PRIM):
        test_alphas.append(jnp.zeros((1, NUM_PRIM), jnp.float32).at[0, s].set(1.0))

    for la in test_alphas:
        p2 = dict(params)
        p2["log_alpha"] = la
        inf, wloss, _ = nasp_v_forward(p2, feat_idx, label, pos_weights, trans=True)
        inf = jax.block_until_ready(inf)
        wloss = jax.block_until_ready(wloss)

        ref_inf, ref_wloss = reference_forward(p2, feat_idx, label, pos_weights,
                                               trans=True)
        np.testing.assert_allclose(np.asarray(inf), np.asarray(ref_inf),
                                   rtol=1e-2, atol=1e-2)
        np.testing.assert_allclose(float(wloss), float(ref_wloss),
                                   rtol=2e-2, atol=2e-2)

    print("KERNEL_OK")
</pallas_src>

<mosaic_0001>
module attributes {stable_mosaic.version = 11 : i64} {
  func.func @_nasp_kernel(%arg0: i32, %arg1: memref<1xi32, #tpu.memory_space<smem>>, %arg2: memref<2x32xf32, #tpu.memory_space<smem>>, %arg3: memref<24x128xf32, #tpu.memory_space<vmem>>, %arg4: memref<24x128xf32, #tpu.memory_space<vmem>>, %arg5: memref<1x128xf32, #tpu.memory_space<vmem>>, %arg6: memref<232x24xf32, #tpu.memory_space<vmem>>, %arg7: memref<232x24xf32, #tpu.memory_space<vmem>>, %arg8: memref<2x232x128xf32, #tpu.memory_space<vmem>>, %arg9: memref<2x232x128xf32, #tpu.memory_space<vmem>>, %arg10: memref<128x8xf32, #tpu.memory_space<vmem>>, %arg11: memref<2x8xf32, #tpu.memory_space<vmem>>, %arg12: memref<2x8xf32, #tpu.memory_space<vmem>>, %arg13: memref<2x8xf32, #tpu.memory_space<vmem>>, %arg14: memref<1x1xf32, #tpu.memory_space<vmem>>) attributes {dimension_semantics = [#tpu.dimension_semantics<arbitrary>], iteration_bounds = array<i64: 1>, scalar_prefetch = 0 : i64, scratch_operands = 0 : i64, tpu.core_type = #tpu.core_type<tc>, window_params = [{transform_indices = @transform_0, window_bounds = array<i64: 1>}, {transform_indices = @transform_1, window_bounds = array<i64: 2, 32>}, {pipeline_mode = #tpu.pipeline_mode<synchronous>, transform_indices = @transform_2, window_bounds = array<i64: 24, 128>}, {pipeline_mode = #tpu.pipeline_mode<synchronous>, transform_indices = @transform_3, window_bounds = array<i64: 24, 128>}, {pipeline_mode = #tpu.pipeline_mode<synchronous>, transform_indices = @transform_4, window_bounds = array<i64: 1, 128>}, {pipeline_mode = #tpu.pipeline_mode<synchronous>, transform_indices = @transform_5, window_bounds = array<i64: 232, 24>}, {pipeline_mode = #tpu.pipeline_mode<synchronous>, transform_indices = @transform_6, window_bounds = array<i64: 232, 24>}, {pipeline_mode = #tpu.pipeline_mode<synchronous>, transform_indices = @transform_7, window_bounds = array<i64: 2, 232, 128>}, {pipeline_mode = #tpu.pipeline_mode<synchronous>, transform_indices = @transform_8, window_bounds = array<i64: 2, 232, 128>}, {pipeline_mode = #tpu.pipeline_mode<synchronous>, transform_indices = @transform_9, window_bounds = array<i64: 128, 8>}, {pipeline_mode = #tpu.pipeline_mode<synchronous>, transform_indices = @transform_10, window_bounds = array<i64: 2, 8>}, {pipeline_mode = #tpu.pipeline_mode<synchronous>, transform_indices = @transform_11, window_bounds = array<i64: 2, 8>}, {pipeline_mode = #tpu.pipeline_mode<synchronous>, transform_indices = @transform_12, window_bounds = array<i64: 2, 8>}, {pipeline_mode = #tpu.pipeline_mode<synchronous>, transform_indices = @transform_13, window_bounds = array<i64: 1, 1>}]} {
    %c0 = arith.constant 0 : index
    %c0_0 = arith.constant 0 : index
    %0 = vector.load %arg3[%c0, %c0_0] : memref<24x128xf32, #tpu.memory_space<vmem>>, vector<24x128xf32>
    %c0_1 = arith.constant 0 : index
    %c0_2 = arith.constant 0 : index
    %1 = vector.load %arg4[%c0_1, %c0_2] : memref<24x128xf32, #tpu.memory_space<vmem>>, vector<24x128xf32>
    %cst = arith.constant 0.000000e+00 : f32
    %2 = vector.broadcast %cst : f32 to vector<24x128xf32>
    %3 = arith.maximumf %1, %2 : vector<24x128xf32>
    %4 = math.absf %1 : vector<24x128xf32>
    %cst_3 = arith.constant 0.000000e+00 : f32
    %5 = vector.broadcast %cst_3 : f32 to vector<24x128xf32>
    %6 = arith.subf %5, %4 : vector<24x128xf32>
    %7 = math.exp %6 : vector<24x128xf32>
    %cst_4 = arith.constant 1.000000e+00 : f32
    %8 = vector.broadcast %cst_4 : f32 to vector<24x128xf32>
    %9 = arith.addf %8, %7 : vector<24x128xf32>
    %10 = math.log %9 : vector<24x128xf32>
    %11 = arith.addf %3, %10 : vector<24x128xf32>
    %c0_5 = arith.constant 0 : index
    %c0_6 = arith.constant 0 : index
    %12 = vector.load %arg5[%c0_5, %c0_6] : memref<1x128xf32, #tpu.memory_space<vmem>>, vector<1x128xf32>
    %13 = vector.broadcast %12 : vector<1x128xf32> to vector<24x128xf32>
    %14 = arith.mulf %11, %13 : vector<24x128xf32>
    %cst_7 = arith.constant 0.00999999977 : f32
    %15 = vector.broadcast %cst_7 : f32 to vector<24x128xf32>
    %16 = arith.mulf %14, %15 : vector<24x128xf32>
    %17 = arith.addf %0, %16 : vector<24x128xf32>
    %c0_8 = arith.constant 0 : index
    %c24 = arith.constant 24 : index
    %18 = memref.load %arg2[%c0_8, %c24] : memref<2x32xf32, #tpu.memory_space<smem>>
    %19 = vector.broadcast %18 : f32 to vector<24x128xf32>
    %c0_9 = arith.constant 0 : index
    %c16 = arith.constant 16 : index
    %20 = memref.load %arg2[%c0_9, %c16] : memref<2x32xf32, #tpu.memory_space<smem>>
    %c0_10 = arith.constant 0 : index
    %c0_11 = arith.constant 0 : index
    %21 = memref.load %arg2[%c0_10, %c0_11] : memref<2x32xf32, #tpu.memory_space<smem>>
    %22 = vector.broadcast %21 : f32 to vector<24x128xf32>
    %23 = arith.mulf %17, %22 : vector<24x128xf32>
    %c0_12 = arith.constant 0 : index
    %c8 = arith.constant 8 : index
    %24 = memref.load %arg2[%c0_12, %c8] : memref<2x32xf32, #tpu.memory_space<smem>>
    %25 = vector.broadcast %24 : f32 to vector<24x128xf32>
    %26 = arith.addf %23, %25 : vector<24x128xf32>
    %27 = math.tanh %26 : vector<24x128xf32>
    %28 = vector.broadcast %20 : f32 to vector<24x128xf32>
    %29 = arith.mulf %28, %27 : vector<24x128xf32>
    %30 = arith.addf %19, %29 : vector<24x128xf32>
    %c0_13 = arith.constant 0 : index
    %c17 = arith.constant 17 : index
    %31 = memref.load %arg2[%c0_13, %c17] : memref<2x32xf32, #tpu.memory_space<smem>>
    %c0_14 = arith.constant 0 : index
    %c1 = arith.constant 1 : index
    %32 = memref.load %arg2[%c0_14, %c1] : memref<2x32xf32, #tpu.memory_space<smem>>
    %33 = vector.broadcast %32 : f32 to vector<24x128xf32>
    %34 = arith.mulf %17, %33 : vector<24x128xf32>
    %c0_15 = arith.constant 0 : index
    %c9 = arith.constant 9 : index
    %35 = memref.load %arg2[%c0_15, %c9] : memref<2x32xf32, #tpu.memory_space<smem>>
    %36 = vector.broadcast %35 : f32 to vector<24x128xf32>
    %37 = arith.addf %34, %36 : vector<24x128xf32>
    %38 = math.tanh %37 : vector<24x128xf32>
    %39 = vector.broadcast %31 : f32 to vector<24x128xf32>
    %40 = arith.mulf %39, %38 : vector<24x128xf32>
    %41 = arith.addf %30, %40 : vector<24x128xf32>
    %c0_16 = arith.constant 0 : index
    %c18 = arith.constant 18 : index
    %42 = memref.load %arg2[%c0_16, %c18] : memref<2x32xf32, #tpu.memory_space<smem>>
    %c0_17 = arith.constant 0 : index
    %c2 = arith.constant 2 : index
    %43 = memref.load %arg2[%c0_17, %c2] : memref<2x32xf32, #tpu.memory_space<smem>>
    %44 = vector.broadcast %43 : f32 to vector<24x128xf32>
    %45 = arith.mulf %17, %44 : vector<24x128xf32>
    %c0_18 = arith.constant 0 : index
    %c10 = arith.constant 10 : index
    %46 = memref.load %arg2[%c0_18, %c10] : memref<2x32xf32, #tpu.memory_space<smem>>
    %47 = vector.broadcast %46 : f32 to vector<24x128xf32>
    %48 = arith.addf %45, %47 : vector<24x128xf32>
    %49 = math.tanh %48 : vector<24x128xf32>
    %50 = vector.broadcast %42 : f32 to vector<24x128xf32>
    %51 = arith.mulf %50, %49 : vector<24x128xf32>
    %52 = arith.addf %41, %51 : vector<24x128xf32>
    %c0_19 = arith.constant 0 : index
    %c19 = arith.constant 19 : index
    %53 = memref.load %arg2[%c0_19, %c19] : memref<2x32xf32, #tpu.memory_space<smem>>
    %c0_20 = arith.constant 0 : index
    %c3 = arith.constant 3 : index
    %54 = memref.load %arg2[%c0_20, %c3] : memref<2x32xf32, #tpu.memory_space<smem>>
    %55 = vector.broadcast %54 : f32 to vector<24x128xf32>
    %56 = arith.mulf %17, %55 : vector<24x128xf32>
    %c0_21 = arith.constant 0 : index
    %c11 = arith.constant 11 : index
    %57 = memref.load %arg2[%c0_21, %c11] : memref<2x32xf32, #tpu.memory_space<smem>>
    %58 = vector.broadcast %57 : f32 to vector<24x128xf32>
    %59 = arith.addf %56, %58 : vector<24x128xf32>
    %60 = math.tanh %59 : vector<24x128xf32>
    %61 = vector.broadcast %53 : f32 to vector<24x128xf32>
    %62 = arith.mulf %61, %60 : vector<24x128xf32>
    %63 = arith.addf %52, %62 : vector<24x128xf32>
    %c0_22 = arith.constant 0 : index
    %c20 = arith.constant 20 : index
    %64 = memref.load %arg2[%c0_22, %c20] : memref<2x32xf32, #tpu.memory_space<smem>>
    %c0_23 = arith.constant 0 : index
    %c4 = arith.constant 4 : index
    %65 = memref.load %arg2[%c0_23, %c4] : memref<2x32xf32, #tpu.memory_space<smem>>
    %66 = vector.broadcast %65 : f32 to vector<24x128xf32>
    %67 = arith.mulf %17, %66 : vector<24x128xf32>
    %c0_24 = arith.constant 0 : index
    %c12 = arith.constant 12 : index
    %68 = memref.load %arg2[%c0_24, %c12] : memref<2x32xf32, #tpu.memory_space<smem>>
    %69 = vector.broadcast %68 : f32 to vector<24x128xf32>
    %70 = arith.addf %67, %69 : vector<24x128xf32>
    %71 = math.tanh %70 : vector<24x128xf32>
    %72 = vector.broadcast %64 : f32 to vector<24x128xf32>
    %73 = arith.mulf %72, %71 : vector<24x128xf32>
    %74 = arith.addf %63, %73 : vector<24x128xf32>
    %c0_25 = arith.constant 0 : index
    %c21 = arith.constant 21 : index
    %75 = memref.load %arg2[%c0_25, %c21] : memref<2x32xf32, #tpu.memory_space<smem>>
    %c0_26 = arith.constant 0 : index
    %c5 = arith.constant 5 : index
    %76 = memref.load %arg2[%c0_26, %c5] : memref<2x32xf32, #tpu.memory_space<smem>>
    %77 = vector.broadcast %76 : f32 to vector<24x128xf32>
    %78 = arith.mulf %17, %77 : vector<24x128xf32>
    %c0_27 = arith.constant 0 : index
    %c13 = arith.constant 13 : index
    %79 = memref.load %arg2[%c0_27, %c13] : memref<2x32xf32, #tpu.memory_space<smem>>
    %80 = vector.broadcast %79 : f32 to vector<24x128xf32>
    %81 = arith.addf %78, %80 : vector<24x128xf32>
    %82 = math.tanh %81 : vector<24x128xf32>
    %83 = vector.broadcast %75 : f32 to vector<24x128xf32>
    %84 = arith.mulf %83, %82 : vector<24x128xf32>
    %85 = arith.addf %74, %84 : vector<24x128xf32>
    %c0_28 = arith.constant 0 : index
    %c22 = arith.constant 22 : index
    %86 = memref.load %arg2[%c0_28, %c22] : memref<2x32xf32, #tpu.memory_space<smem>>
    %c0_29 = arith.constant 0 : index
    %c6 = arith.constant 6 : index
    %87 = memref.load %arg2[%c0_29, %c6] : memref<2x32xf32, #tpu.memory_space<smem>>
    %88 = vector.broadcast %87 : f32 to vector<24x128xf32>
    %89 = arith.mulf %17, %88 : vector<24x128xf32>
    %c0_30 = arith.constant 0 : index
    %c14 = arith.constant 14 : index
    %90 = memref.load %arg2[%c0_30, %c14] : memref<2x32xf32, #tpu.memory_space<smem>>
    %91 = vector.broadcast %90 : f32 to vector<24x128xf32>
    %92 = arith.addf %89, %91 : vector<24x128xf32>
    %93 = math.tanh %92 : vector<24x128xf32>
    %94 = vector.broadcast %86 : f32 to vector<24x128xf32>
    %95 = arith.mulf %94, %93 : vector<24x128xf32>
    %96 = arith.addf %85, %95 : vector<24x128xf32>
    %c0_31 = arith.constant 0 : index
    %c23 = arith.constant 23 : index
    %97 = memref.load %arg2[%c0_31, %c23] : memref<2x32xf32, #tpu.memory_space<smem>>
    %c0_32 = arith.constant 0 : index
    %c7 = arith.constant 7 : index
    %98 = memref.load %arg2[%c0_32, %c7] : memref<2x32xf32, #tpu.memory_space<smem>>
    %99 = vector.broadcast %98 : f32 to vector<24x128xf32>
    %100 = arith.mulf %17, %99 : vector<24x128xf32>
    %c0_33 = arith.constant 0 : index
    %c15 = arith.constant 15 : index
    %101 = memref.load %arg2[%c0_33, %c15] : memref<2x32xf32, #tpu.memory_space<smem>>
    %102 = vector.broadcast %101 : f32 to vector<24x128xf32>
    %103 = arith.addf %100, %102 : vector<24x128xf32>
    %104 = math.tanh %103 : vector<24x128xf32>
    %105 = vector.broadcast %97 : f32 to vector<24x128xf32>
    %106 = arith.mulf %105, %104 : vector<24x128xf32>
    %107 = arith.addf %96, %106 : vector<24x128xf32>
    %c1_34 = arith.constant 1 : index
    %c24_35 = arith.constant 24 : index
    %108 = memref.load %arg2[%c1_34, %c24_35] : memref<2x32xf32, #tpu.memory_space<smem>>
    %109 = vector.broadcast %108 : f32 to vector<24x128xf32>
    %c1_36 = arith.constant 1 : index
    %c16_37 = arith.constant 16 : index
    %110 = memref.load %arg2[%c1_36, %c16_37] : memref<2x32xf32, #tpu.memory_space<smem>>
    %c1_38 = arith.constant 1 : index
    %c0_39 = arith.constant 0 : index
    %111 = memref.load %arg2[%c1_38, %c0_39] : memref<2x32xf32, #tpu.memory_space<smem>>
    %112 = vector.broadcast %111 : f32 to vector<24x128xf32>
    %113 = arith.mulf %17, %112 : vector<24x128xf32>
    %c1_40 = arith.constant 1 : index
    %c8_41 = arith.constant 8 : index
    %114 = memref.load %arg2[%c1_40, %c8_41] : memref<2x32xf32, #tpu.memory_space<smem>>
    %115 = vector.broadcast %114 : f32 to vector<24x128xf32>
    %116 = arith.addf %113, %115 : vector<24x128xf32>
    %117 = math.tanh %116 : vector<24x128xf32>
    %118 = vector.broadcast %110 : f32 to vector<24x128xf32>
    %119 = arith.mulf %118, %117 : vector<24x128xf32>
    %120 = arith.addf %109, %119 : vector<24x128xf32>
    %c1_42 = arith.constant 1 : index
    %c17_43 = arith.constant 17 : index
    %121 = memref.load %arg2[%c1_42, %c17_43] : memref<2x32xf32, #tpu.memory_space<smem>>
    %c1_44 = arith.constant 1 : index
    %c1_45 = arith.constant 1 : index
    %122 = memref.load %arg2[%c1_44, %c1_45] : memref<2x32xf32, #tpu.memory_space<smem>>
    %123 = vector.broadcast %122 : f32 to vector<24x128xf32>
    %124 = arith.mulf %17, %123 : vector<24x128xf32>
    %c1_46 = arith.constant 1 : index
    %c9_47 = arith.constant 9 : index
    %125 = memref.load %arg2[%c1_46, %c9_47] : memref<2x32xf32, #tpu.memory_space<smem>>
    %126 = vector.broadcast %125 : f32 to vector<24x128xf32>
    %127 = arith.addf %124, %126 : vector<24x128xf32>
    %128 = math.tanh %127 : vector<24x128xf32>
    %129 = vector.broadcast %121 : f32 to vector<24x128xf32>
    %130 = arith.mulf %129, %128 : vector<24x128xf32>
    %131 = arith.addf %120, %130 : vector<24x128xf32>
    %c1_48 = arith.constant 1 : index
    %c18_49 = arith.constant 18 : index
    %132 = memref.load %arg2[%c1_48, %c18_49] : memref<2x32xf32, #tpu.memory_space<smem>>
    %c1_50 = arith.constant 1 : index
    %c2_51 = arith.constant 2 : index
    %133 = memref.load %arg2[%c1_50, %c2_51] : memref<2x32xf32, #tpu.memory_space<smem>>
    %134 = vector.broadcast %133 : f32 to vector<24x128xf32>
    %135 = arith.mulf %17, %134 : vector<24x128xf32>
    %c1_52 = arith.constant 1 : index
    %c10_53 = arith.constant 10 : index
    %136 = memref.load %arg2[%c1_52, %c10_53] : memref<2x32xf32, #tpu.memory_space<smem>>
    %137 = vector.broadcast %136 : f32 to vector<24x128xf32>
    %138 = arith.addf %135, %137 : vector<24x128xf32>
    %139 = math.tanh %138 : vector<24x128xf32>
    %140 = vector.broadcast %132 : f32 to vector<24x128xf32>
    %141 = arith.mulf %140, %139 : vector<24x128xf32>
    %142 = arith.addf %131, %141 : vector<24x128xf32>
    %c1_54 = arith.constant 1 : index
    %c19_55 = arith.constant 19 : index
    %143 = memref.load %arg2[%c1_54, %c19_55] : memref<2x32xf32, #tpu.memory_space<smem>>
    %c1_56 = arith.constant 1 : index
    %c3_57 = arith.constant 3 : index
    %144 = memref.load %arg2[%c1_56, %c3_57] : memref<2x32xf32, #tpu.memory_space<smem>>
    %145 = vector.broadcast %144 : f32 to vector<24x128xf32>
    %146 = arith.mulf %17, %145 : vector<24x128xf32>
    %c1_58 = arith.constant 1 : index
    %c11_59 = arith.constant 11 : index
    %147 = memref.load %arg2[%c1_58, %c11_59] : memref<2x32xf32, #tpu.memory_space<smem>>
    %148 = vector.broadcast %147 : f32 to vector<24x128xf32>
    %149 = arith.addf %146, %148 : vector<24x128xf32>
    %150 = math.tanh %149 : vector<24x128xf32>
    %151 = vector.broadcast %143 : f32 to vector<24x128xf32>
    %152 = arith.mulf %151, %150 : vector<24x128xf32>
    %153 = arith.addf %142, %152 : vector<24x128xf32>
    %c1_60 = arith.constant 1 : index
    %c20_61 = arith.constant 20 : index
    %154 = memref.load %arg2[%c1_60, %c20_61] : memref<2x32xf32, #tpu.memory_space<smem>>
    %c1_62 = arith.constant 1 : index
    %c4_63 = arith.constant 4 : index
    %155 = memref.load %arg2[%c1_62, %c4_63] : memref<2x32xf32, #tpu.memory_space<smem>>
    %156 = vector.broadcast %155 : f32 to vector<24x128xf32>
    %157 = arith.mulf %17, %156 : vector<24x128xf32>
    %c1_64 = arith.constant 1 : index
    %c12_65 = arith.constant 12 : index
    %158 = memref.load %arg2[%c1_64, %c12_65] : memref<2x32xf32, #tpu.memory_space<smem>>
    %159 = vector.broadcast %158 : f32 to vector<24x128xf32>
    %160 = arith.addf %157, %159 : vector<24x128xf32>
    %161 = math.tanh %160 : vector<24x128xf32>
    %162 = vector.broadcast %154 : f32 to vector<24x128xf32>
    %163 = arith.mulf %162, %161 : vector<24x128xf32>
    %164 = arith.addf %153, %163 : vector<24x128xf32>
    %c1_66 = arith.constant 1 : index
    %c21_67 = arith.constant 21 : index
    %165 = memref.load %arg2[%c1_66, %c21_67] : memref<2x32xf32, #tpu.memory_space<smem>>
    %c1_68 = arith.constant 1 : index
    %c5_69 = arith.constant 5 : index
    %166 = memref.load %arg2[%c1_68, %c5_69] : memref<2x32xf32, #tpu.memory_space<smem>>
    %167 = vector.broadcast %166 : f32 to vector<24x128xf32>
    %168 = arith.mulf %17, %167 : vector<24x128xf32>
    %c1_70 = arith.constant 1 : index
    %c13_71 = arith.constant 13 : index
    %169 = memref.load %arg2[%c1_70, %c13_71] : memref<2x32xf32, #tpu.memory_space<smem>>
    %170 = vector.broadcast %169 : f32 to vector<24x128xf32>
    %171 = arith.addf %168, %170 : vector<24x128xf32>
    %172 = math.tanh %171 : vector<24x128xf32>
    %173 = vector.broadcast %165 : f32 to vector<24x128xf32>
    %174 = arith.mulf %173, %172 : vector<24x128xf32>
    %175 = arith.addf %164, %174 : vector<24x128xf32>
    %c1_72 = arith.constant 1 : index
    %c22_73 = arith.constant 22 : index
    %176 = memref.load %arg2[%c1_72, %c22_73] : memref<2x32xf32, #tpu.memory_space<smem>>
    %c1_74 = arith.constant 1 : index
    %c6_75 = arith.constant 6 : index
    %177 = memref.load %arg2[%c1_74, %c6_75] : memref<2x32xf32, #tpu.memory_space<smem>>
    %178 = vector.broadcast %177 : f32 to vector<24x128xf32>
    %179 = arith.mulf %17, %178 : vector<24x128xf32>
    %c1_76 = arith.constant 1 : index
    %c14_77 = arith.constant 14 : index
    %180 = memref.load %arg2[%c1_76, %c14_77] : memref<2x32xf32, #tpu.memory_space<smem>>
    %181 = vector.broadcast %180 : f32 to vector<24x128xf32>
    %182 = arith.addf %179, %181 : vector<24x128xf32>
    %183 = math.tanh %182 : vector<24x128xf32>
    %184 = vector.broadcast %176 : f32 to vector<24x128xf32>
    %185 = arith.mulf %184, %183 : vector<24x128xf32>
    %186 = arith.addf %175, %185 : vector<24x128xf32>
    %c1_78 = arith.constant 1 : index
    %c23_79 = arith.constant 23 : index
    %187 = memref.load %arg2[%c1_78, %c23_79] : memref<2x32xf32, #tpu.memory_space<smem>>
    %c1_80 = arith.constant 1 : index
    %c7_81 = arith.constant 7 : index
    %188 = memref.load %arg2[%c1_80, %c7_81] : memref<2x32xf32, #tpu.memory_space<smem>>
    %189 = vector.broadcast %188 : f32 to vector<24x128xf32>
    %190 = arith.mulf %17, %189 : vector<24x128xf32>
    %c1_82 = arith.constant 1 : index
    %c15_83 = arith.constant 15 : index
    %191 = memref.load %arg2[%c1_82, %c15_83] : memref<2x32xf32, #tpu.memory_space<smem>>
    %192 = vector.broadcast %191 : f32 to vector<24x128xf32>
    %193 = arith.addf %190, %192 : vector<24x128xf32>
    %194 = math.tanh %193 : vector<24x128xf32>
    %195 = vector.broadcast %187 : f32 to vector<24x128xf32>
    %196 = arith.mulf %195, %194 : vector<24x128xf32>
    %197 = arith.addf %186, %196 : vector<24x128xf32>
    %c0_84 = arith.constant 0 : index
    %c0_85 = arith.constant 0 : index
    %198 = vector.load %arg6[%c0_84, %c0_85] : memref<232x24xf32, #tpu.memory_space<vmem>>, vector<232x24xf32>
    %cst_86 = arith.constant dense<0.000000e+00> : vector<232x128xf32>
    %199 = tpu.matmul %198, %107, %cst_86 {dimension_numbers = #tpu.dot_dimension_numbers<[1], [0], [0], [1], [0, 0, 1, 1], [], []>} : vector<232x24xf32>, vector<24x128xf32>, vector<232x128xf32> -> vector<232x128xf32>
    %c0_87 = arith.constant 0 : index
    %c0_88 = arith.constant 0 : index
    %200 = vector.load %arg7[%c0_87, %c0_88] : memref<232x24xf32, #tpu.memory_space<vmem>>, vector<232x24xf32>
    %cst_89 = arith.constant dense<0.000000e+00> : vector<232x128xf32>
    %201 = tpu.matmul %200, %197, %cst_89 {dimension_numbers = #tpu.dot_dimension_numbers<[1], [0], [0], [1], [0, 0, 1, 1], [], []>} : vector<232x24xf32>, vector<24x128xf32>, vector<232x128xf32> -> vector<232x128xf32>
    %c0_90 = arith.constant 0 : index
    %202 = memref.load %arg1[%c0_90] : memref<1xi32, #tpu.memory_space<smem>>
    %203 = arith.addf %199, %201 : vector<232x128xf32>
    %c1_i32 = arith.constant 1 : i32
    %204 = arith.cmpi eq, %202, %c1_i32 : i32
    %205 = arith.mulf %199, %201 : vector<232x128xf32>
    %206 = arith.select %204, %205, %203 : vector<232x128xf32>
    %c2_i32 = arith.constant 2 : i32
    %207 = arith.cmpi eq, %202, %c2_i32 : i32
    %208 = arith.maximumf %199, %201 : vector<232x128xf32>
    %209 = arith.select %207, %208, %206 : vector<232x128xf32>
    %c3_i32 = arith.constant 3 : i32
    %210 = arith.cmpi eq, %202, %c3_i32 : i32
    %211 = arith.minimumf %199, %201 : vector<232x128xf32>
    %212 = arith.select %210, %211, %209 : vector<232x128xf32>
    %c4_i32 = arith.constant 4 : i32
    %213 = arith.cmpi eq, %202, %c4_i32 : i32
    %214 = arith.select %213, %199, %212 : vector<232x128xf32>
    %c0_91 = arith.constant 0 : index
    %c0_92 = arith.constant 0 : index
    %c0_93 = arith.constant 0 : index
    %215 = vector.load %arg8[%c0_91, %c0_92, %c0_93] : memref<2x232x128xf32, #tpu.memory_space<vmem>>, vector<1x232x128xf32>
    %216 = vector.shape_cast %215 : vector<1x232x128xf32> to vector<232x128xf32>
    %217 = arith.mulf %214, %216 : vector<232x128xf32>
    %c0_94 = arith.constant 0 : index
    %c0_95 = arith.constant 0 : index
    %c0_96 = arith.constant 0 : index
    %218 = vector.load %arg9[%c0_94, %c0_95, %c0_96] : memref<2x232x128xf32, #tpu.memory_space<vmem>>, vector<1x232x128xf32>
    %219 = vector.shape_cast %218 : vector<1x232x128xf32> to vector<232x128xf32>
    %220 = arith.mulf %201, %219 : vector<232x128xf32>
    %221 = arith.addf %217, %220 : vector<232x128xf32>
    %c1_97 = arith.constant 1 : index
    %c0_98 = arith.constant 0 : index
    %c0_99 = arith.constant 0 : index
    %222 = vector.load %arg8[%c1_97, %c0_98, %c0_99] : memref<2x232x128xf32, #tpu.memory_space<vmem>>, vector<1x232x128xf32>
    %223 = vector.shape_cast %222 : vector<1x232x128xf32> to vector<232x128xf32>
    %224 = arith.mulf %214, %223 : vector<232x128xf32>
    %c1_100 = arith.constant 1 : index
    %c0_101 = arith.constant 0 : index
    %c0_102 = arith.constant 0 : index
    %225 = vector.load %arg9[%c1_100, %c0_101, %c0_102] : memref<2x232x128xf32, #tpu.memory_space<vmem>>, vector<1x232x128xf32>
    %226 = vector.shape_cast %225 : vector<1x232x128xf32> to vector<232x128xf32>
    %227 = arith.mulf %201, %226 : vector<232x128xf32>
    %228 = arith.addf %224, %227 : vector<232x128xf32>
    %cst_103 = arith.constant dense<0.000000e+00> : vector<128xf32>
    %229 = vector.multi_reduction <add>, %221, %cst_103 [0] : vector<232x128xf32> to vector<128xf32>
    %230 = vector.shape_cast %229 : vector<128xf32> to vector<1x128xf32>
    %cst_104 = arith.constant dense<0.000000e+00> : vector<128xf32>
    %231 = vector.multi_reduction <add>, %228, %cst_104 [0] : vector<232x128xf32> to vector<128xf32>
    %232 = vector.shape_cast %231 : vector<128xf32> to vector<1x128xf32>
    %233 = tpu.concatenate %230, %232 in 0 : vector<1x128xf32>, vector<1x128xf32> -> vector<2x128xf32>
    %c0_105 = arith.constant 0 : index
    %c0_106 = arith.constant 0 : index
    %234 = vector.load %arg10[%c0_105, %c0_106] : memref<128x8xf32, #tpu.memory_space<vmem>>, vector<128x8xf32>
    %cst_107 = arith.constant dense<0.000000e+00> : vector<2x8xf32>
    %235 = tpu.matmul %233, %234, %cst_107 {dimension_numbers = #tpu.dot_dimension_numbers<[1], [0], [0], [1], [0, 0, 1, 1], [], []>} : vector<2x128xf32>, vector<128x8xf32>, vector<2x8xf32> -> vector<2x8xf32>
    %c0_108 = arith.constant 0 : index
    %c0_109 = arith.constant 0 : index
    %236 = vector.load %arg13[%c0_108, %c0_109] : memref<2x8xf32, #tpu.memory_space<vmem>>, vector<2x8xf32>
    tpu.vector_store %arg13[%c0_108, %c0_109], %235 {strides = array<i32>} : memref<2x8xf32, #tpu.memory_space<vmem>>, vector<2x8xf32>,
    %c0_110 = arith.constant 0 : index
    %c0_111 = arith.constant 0 : index
    %237 = vector.load %arg11[%c0_110, %c0_111] : memref<2x8xf32, #tpu.memory_space<vmem>>, vector<2x8xf32>
    %238 = arith.subf %235, %237 : vector<2x8xf32>
    %239 = arith.mulf %238, %238 : vector<2x8xf32>
    %c0_112 = arith.constant 0 : index
    %c0_113 = arith.constant 0 : index
    %240 = vector.load %arg12[%c0_112, %c0_113] : memref<2x8xf32, #tpu.memory_space<vmem>>, vector<2x8xf32>
    %241 = arith.mulf %240, %239 : vector<2x8xf32>
    %242 = vector.shape_cast %241 : vector<2x8xf32> to vector<1x2x8xf32>
    %cst_114 = arith.constant dense<0.000000e+00> : vector<1xf32>
    %243 = vector.multi_reduction <add>, %242, %cst_114 [1, 2] : vector<1x2x8xf32> to vector<1xf32>
    %244 = vector.shape_cast %243 : vector<1xf32> to vector<1x1x1xf32>
    %245 = vector.extract %244[0, 0, 0] : f32 from vector<1x1x1xf32>
    %cst_115 = arith.constant 8.000000e+00 : f32
    %246 = arith.divf %245, %cst_115 : f32
    %247 = vector.broadcast %246 : f32 to vector<1x1xf32>
    %c0_116 = arith.constant 0 : index
    %c0_117 = arith.constant 0 : index
    %248 = vector.load %arg14[%c0_116, %c0_117] : memref<1x1xf32, #tpu.memory_space<vmem>>, vector<1x1xf32>
    tpu.vector_store %arg14[%c0_116, %c0_117], %247 {strides = array<i32>} : memref<1x1xf32, #tpu.memory_space<vmem>>, vector<1x1xf32>,
    return
  }
  func.func @transform_0(%arg0: i32) -> i32 {
    %c0_i32 = arith.constant 0 : i32
    %c0_i32_0 = arith.constant 0 : i32
    return %c0_i32 : i32
  }
  func.func @transform_1(%arg0: i32) -> (i32, i32) {
    %c0_i32 = arith.constant 0 : i32
    %c0_i32_0 = arith.constant 0 : i32
    %c0_i32_1 = arith.constant 0 : i32
    return %c0_i32, %c0_i32_0 : i32, i32
  }
  func.func @transform_2(%arg0: i32) -> (i32, i32) {
    %c0_i32 = arith.constant 0 : i32
    %c0_i32_0 = arith.constant 0 : i32
    %c0_i32_1 = arith.constant 0 : i32
    return %c0_i32, %c0_i32_0 : i32, i32
  }
  func.func @transform_3(%arg0: i32) -> (i32, i32) {
    %c0_i32 = arith.constant 0 : i32
    %c0_i32_0 = arith.constant 0 : i32
    %c0_i32_1 = arith.constant 0 : i32
    return %c0_i32, %c0_i32_0 : i32, i32
  }
  func.func @transform_4(%arg0: i32) -> (i32, i32) {
    %c0_i32 = arith.constant 0 : i32
    %c0_i32_0 = arith.constant 0 : i32
    %c0_i32_1 = arith.constant 0 : i32
    return %c0_i32, %c0_i32_0 : i32, i32
  }
  func.func @transform_5(%arg0: i32) -> (i32, i32) {
    %c0_i32 = arith.constant 0 : i32
    %c0_i32_0 = arith.constant 0 : i32
    %c0_i32_1 = arith.constant 0 : i32
    return %c0_i32, %c0_i32_0 : i32, i32
  }
  func.func @transform_6(%arg0: i32) -> (i32, i32) {
    %c0_i32 = arith.constant 0 : i32
    %c0_i32_0 = arith.constant 0 : i32
    %c0_i32_1 = arith.constant 0 : i32
    return %c0_i32, %c0_i32_0 : i32, i32
  }
  func.func @transform_7(%arg0: i32) -> (i32, i32, i32) {
    %c0_i32 = arith.constant 0 : i32
    %c0_i32_0 = arith.constant 0 : i32
    %c0_i32_1 = arith.constant 0 : i32
    %c0_i32_2 = arith.constant 0 : i32
    return %c0_i32, %c0_i32_0, %c0_i32_1 : i32, i32, i32
  }
  func.func @transform_8(%arg0: i32) -> (i32, i32, i32) {
    %c0_i32 = arith.constant 0 : i32
    %c0_i32_0 = arith.constant 0 : i32
    %c0_i32_1 = arith.constant 0 : i32
    %c0_i32_2 = arith.constant 0 : i32
    return %c0_i32, %c0_i32_0, %c0_i32_1 : i32, i32, i32
  }
  func.func @transform_9(%arg0: i32) -> (i32, i32) {
    %c0_i32 = arith.constant 0 : i32
    %c0_i32_0 = arith.constant 0 : i32
    %c0_i32_1 = arith.constant 0 : i32
    return %c0_i32, %c0_i32_0 : i32, i32
  }
  func.func @transform_10(%arg0: i32) -> (i32, i32) {
    %c0_i32 = arith.constant 0 : i32
    %c0_i32_0 = arith.constant 0 : i32
    %c0_i32_1 = arith.constant 0 : i32
    return %c0_i32, %c0_i32_0 : i32, i32
  }
  func.func @transform_11(%arg0: i32) -> (i32, i32) {
    %c0_i32 = arith.constant 0 : i32
    %c0_i32_0 = arith.constant 0 : i32
    %c0_i32_1 = arith.constant 0 : i32
    return %c0_i32, %c0_i32_0 : i32, i32
  }
  func.func @transform_12(%arg0: i32) -> (i32, i32) {
    %c0_i32 = arith.constant 0 : i32
    %c0_i32_0 = arith.constant 0 : i32
    %c0_i32_1 = arith.constant 0 : i32
    return %c0_i32, %c0_i32_0 : i32, i32
  }
  func.func @transform_13(%arg0: i32) -> (i32, i32) {
    %c0_i32 = arith.constant 0 : i32
    %c0_i32_0 = arith.constant 0 : i32
    %c0_i32_1 = arith.constant 0 : i32
    return %c0_i32, %c0_i32_0 : i32, i32
  }
}

</mosaic_0001>

<bundles_post_ra>
// kernel: tpu_custom_call.1
= control target key start
LH: loop header
LB: loop body
LE: loop exit
PB: predicated region body
PF: predicated region fallthrough
CT: control target
= control target key end

     0   :  { %s4135_s0 = inlined_call_operand.<no memory space> [shape: s32[1], index: 0, kind: input, shape index: {}]   ;;  %s4136_s1 = inlined_call_operand.vmem [shape: f32[2,32], index: 1, kind: input, shape index: {}]   ;;  %s4137_s2 = inlined_call_operand.vmem [shape: f32[24,128], index: 2, kind: input, shape index: {}]   ;;  %s4138_s3 = inlined_call_operand.vmem [shape: f32[24,128], index: 3, kind: input, shape index: {}]   ;;  %s4139_s4 = inlined_call_operand.vmem [shape: f32[1,128], index: 4, kind: input, shape index: {}]   ;;  %s4140_s5 = inlined_call_operand.vmem [shape: f32[232,24], index: 5, kind: input, shape index: {}]   ;;  %s4141_s6 = inlined_call_operand.vmem [shape: f32[232,24], index: 6, kind: input, shape index: {}]   ;;  %s4142_s7 = inlined_call_operand.vmem [shape: f32[2,232,128], index: 7, kind: input, shape index: {}]   ;;  %s4143_s8 = inlined_call_operand.hbm [shape: f32[2,232,128], index: 8, kind: input, shape index: {}]   ;;  %s4144_s9 = inlined_call_operand.vmem [shape: f32[128,8], index: 9, kind: input, shape index: {}]   ;;  %s4145_s10 = inlined_call_operand.vmem [shape: f32[2,8], index: 10, kind: input, shape index: {}]   ;;  %s4146_s11 = inlined_call_operand.vmem [shape: f32[2,8], index: 11, kind: input, shape index: {}]   ;;  %s4147_s12 = inlined_call_operand.hbm [shape: f32[2,8], index: 12, kind: output, shape index: {0}]   ;;  %s4148_s13 = inlined_call_operand.hbm [shape: f32[1,1], index: 13, kind: output, shape index: {1}]  }
   0x1   :  { %4174 = sst [smem:[#allocation36_spill]] %s4135_s0 }
   0x2   :  { %4175 = sst [smem:[#allocation37_spill]] %s4137_s2 }
   0x3   :  { %4176 = sst [smem:[#allocation38_spill]] %s4140_s5 }
   0x4   :  { %4177 = sst [smem:[#allocation39_spill]] %s4141_s6 }
   0x5   :  { %4178 = sst [smem:[#allocation40_spill]] %s4142_s7 }
   0x6   :  { %4179 = sst [smem:[#allocation41_spill]] %s4144_s9 }
   0x7   :  { %4180 = sst [smem:[#allocation42_spill]] %s4145_s10 }
   0x8   :  { %4181 = sst [smem:[#allocation43_spill]] %s4146_s11 }
   0x9   :  { %4182 = sst [smem:[#allocation44_spill]] %s4147_s12 }
   0xa   :  { %4183 = sst [smem:[#allocation45_spill]] %s4148_s13 }
   0xb   :  { %20 = vsyncpa [#allocation6], 0 }
   0xc   :  { %21 = vsyncpa [#allocation4], 0 }
   0xd   :  { %22 = vsyncpa [#allocation5], 0 }
   0xe   :  { %23 = vsyncpa [#allocation10], 0  ;;  %s32_s27 = sshll.u32 %s4136_s1, 4  ;;  %s33_s27 = int_to_ptr.vmem [resolvable:$true] %s32_s27 }
   0xf   :  { %s2422_s28 = scalar_lea.vmem %s33_s27, 32  ;;  %p2427_p1 = scmp.lt.s32.totalorder %s33_s27, %s33_s27 }
  0x10   :  { %p2423_p0 = scmp.ne.s32.totalorder %s33_s27, %s2422_s28  ;;  %p2428_p2 = scmp.lt.s32.totalorder %s2422_s28, %s2422_s28 }
  0x12   :  { %p2429_p3 = por %p2428_p2, %p2427_p1 }
  0x14   :  { %p2430_p4 = pnand %p2429_p3, %p2423_p0 }
  0x16   :  { %2433 = shalt.err (!%p2430_p4)
}
  0x17   :  { %s2502_s29 = smov [#allocation3]   ;;  %s2503_s30 = smov [#allocation7]  }
  0x18   :  { %35 = dma.vmem_to_smem %s33_s27, 32, %s2502_s29, [#allocation6]  }
  0x19   :  { %s53_s14 = sshll.u32 %s2503_s30, 4  ;;  %s54_s14 = int_to_ptr.vmem [resolvable:$true] %s53_s14 }
  0x1a   :  { %s2442_s15 = scalar_lea.vmem %s54_s14, 7424  ;;  %p2447_p6 = scmp.lt.s32.totalorder %s54_s14, %s54_s14 }
  0x1b   :  { %p2443_p5 = scmp.ne.s32.totalorder %s54_s14, %s2442_s15  ;;  %p2448_p7 = scmp.lt.s32.totalorder %s2442_s15, %s2442_s15 }
  0x1d   :  { %p2449_p8 = por %p2448_p7, %p2447_p6 }
  0x1f   :  { %p2450_p9 = pnand %p2449_p8, %p2443_p5 }
  0x21   :  { %2453 = shalt.err (!%p2450_p9)
}
  0x22   :  { %s2504_s1 = smov 128   ;;  %s2505_s16 = smov 8  }
  0x23   :  { %59 = dma.hbm_to_vmem [thread:$0]  %s4143_s8, 7424, %s54_s14, [#allocation4], %s2504_s1, %s2504_s1, %s2505_s16  }
  0x24   :  { %2494 = dma.done.wait [#allocation6], 32  }
  0x25   :  { %2495 = vsyncadd [#allocation6], 4294967264 }
  0x26   :  { %2496 = dma.done.wait [#allocation4], 7424  }
  0x27   :  { %2497 = vsyncadd [#allocation4], 4294959872 }
  0x28   :  { %72 = sfence }
  0x29   :  { %v2589_v0 = vld [vmem:[%s4138_s3 + $0x10] sm:$0xff]  ;;  %v4155_v1 = vmov 0.0   ;;  %s2594_s21 = sld [smem:[#allocation3 + $0x18]]  ;;  %v2601_v3 = vld [vmem:[%s4138_s3 + $0x8] sm:$0xff]  ;;  %v2606_v4 = vld [vmem:[%s4138_s3] sm:$0xff]  ;;  %vm2507_vm0 = vmmov 0  }
  0x2a   :  { %2083 = vmatprep.subr.mxu0 %v4155_v1  ;;  %2176 = vmatprep.subr.mxu1 %v4155_v1  ;;  %v84_v2 = vand.u32 2147483647, %v2589_v0  ;;  %s2596_s8 = sld [smem:[#allocation3 + $0x10]]  ;;  %v83_v6 = vand.u32 2147483647, %v2601_v3  ;;  %v81_v19 = vmax.f32 %v2589_v0, 0.0 }
  0x2b   :  { %2089 = vmatprep.mubr.msk.f32.mxu0 %vm2507_vm0, %v4155_v1  ;;  %2182 = vmatprep.mubr.msk.f32.mxu1 %vm2507_vm0, %v4155_v1  ;;  %s2612_s26 = sld [smem:[#allocation3]]  ;;  %v82_v7 = vand.u32 2147483647, %v2606_v4  ;;  %v80_v22 = vmax.f32 %v2601_v3, 0.0  ;;  %v79_v23 = vmax.f32 %v2606_v4, 0.0  ;;  %vm491_vm1 = vcmask 195584  }
  0x2c   :  { %v87_v5 = vsub.f32 0.0, %v84_v2  ;;  %s2615_s27 = sld [smem:[#allocation3 + $0x8]]  ;;  %v86_v9 = vsub.f32 0.0, %v83_v6  ;;  %v1865_v34 = vld [vmem:[%s4139_s4] ss:$0 sm:$0xff]  ;;  %vm1724_vm6 = vcmask 1040384  }
  0x2d   :  { %s2618_s28 = sld [smem:[#allocation3 + $0x11]]  ;;  %v85_v10 = vsub.f32 0.0, %v82_v7  ;;  %vm1812_vm7 = vcmask 58368  }
  0x2e   :  { %v92_v8 = vmul.f32 1.442695, %v87_v5  ;;  %s2620_s3 = sld [smem:[#allocation3 + $0x1]]  ;;  %v90_v11 = vmul.f32 1.442695, %v86_v9 }
  0x2f   :  { %s2622_s29 = sld [smem:[#allocation3 + $0x9]]  ;;  %v88_v12 = vmul.f32 1.442695, %v85_v10  ;;  %v2678_v20 = vstv %s2594_s21 }
  0x30   :  { %2314 = vpow2.f32 %v92_v8  ;;  %s2624_s30 = sld [smem:[#allocation3 + $0x12]]  ;;  %v2681_v21 = vstv %s2596_s8 }
  0x31   :  { %s2626_s14 = sld [smem:[#allocation3 + $0x2]]  ;;  %2316 = vpow2.f32 %v90_v11  ;;  %v2688_v24 = vstv %s2612_s26 }
  0x32   :  { %s2628_s15 = sld [smem:[#allocation3 + $0xa]]  ;;  %2318 = vpow2.f32 %v88_v12  ;;  %v2691_v25 = vstv %s2615_s27 }
  0x33   :  { %s2630_s1 = sld [smem:[#allocation3 + $0x13]]  ;;  %v2697_v27 = vstv %s2618_s28 }
  0x34   :  { %s2632_s16 = sld [smem:[#allocation3 + $0x3]]  ;;  %v2694_v26 = vstv %s2620_s3 }
  0x35   :  { %s2634_s17 = sld [smem:[#allocation3 + $0xb]]  ;;  %v2702_v29 = vstv %s2622_s29 }
  0x36   :  { %s2636_s18 = sld [smem:[#allocation3 + $0x14]]  ;;  %v2711_v32 = vstv %s2624_s30 }
  0x37   :  { %s2638_s19 = sld [smem:[#allocation3 + $0x4]]  ;;  %v2705_v30 = vstv %s2626_s14 }
  0x38   :  { %s2640_s20 = sld [smem:[#allocation3 + $0xc]]  ;;  %4188 = vst [vmem:[#allocation19_spill] sm:$0xff] %v2705_v30  ;;  %v2708_v31 = vstv %s2628_s15 }
  0x39   :  { %s2642_s22 = sld [smem:[#allocation3 + $0x15]]  ;;  %v2725_v37 = vstv %s2630_s1 }
  0x3a   :  { %s2644_s23 = sld [smem:[#allocation3 + $0x5]]  ;;  %v2719_v35 = vstv %s2632_s16 }
  0x3b   :  { %s2646_s24 = sld [smem:[#allocation3 + $0xd]]  ;;  %4189 = vst [vmem:[#allocation20_spill] sm:$0xff] %v2719_v35  ;;  %v2722_v36 = vstv %s2634_s17 }
  0x3c   :  { %s2648_s25 = sld [smem:[#allocation3 + $0x16]]  ;;  %4190 = vst [vmem:[#allocation21_spill] sm:$0xff] %v2722_v36  ;;  %v2736_v41 = vstv %s2636_s18 }
  0x3d   :  { %v2315_v13 = vpop.eup %2314  ;;  %s2650_s13 = sld [smem:[#allocation3 + $0x6]]  ;;  %v2730_v39 = vstv %s2638_s19 }
  0x3e   :  { %v96_v14 = vadd.f32 1.0, %v2315_v13  ;;  %v2317_v15 = vpop.eup %2316  ;;  %s2652_s12 = sld [smem:[#allocation3 + $0xe]]  ;;  %v2733_v40 = vstv %s2640_s20 }
  0x3f   :  { %v2319_v16 = vpop.eup %2318  ;;  %s2654_s11 = sld [smem:[#allocation3 + $0x17]]  ;;  %v95_v17 = vadd.f32 1.0, %v2317_v15  ;;  %4191 = vst [vmem:[#allocation22_spill] sm:$0xff] %v2733_v40  ;;  %v2739_v42 = vstv %s2642_s22 }
  0x40   :  { %2320 = vlog2.f32 %v96_v14  ;;  %s2656_s10 = sld [smem:[#allocation3 + $0x7]]  ;;  %v94_v18 = vadd.f32 1.0, %v2319_v16  ;;  %v2744_v45 = vstv %s2644_s23 }
  0x41   :  { %s2658_s7 = sld [smem:[#allocation3 + $0xf]]  ;;  %2322 = vlog2.f32 %v95_v17  ;;  %4195 = vst [vmem:[#allocation23_spill] sm:$0xff] %v2744_v45  ;;  %v2747_v46 = vstv %s2646_s24 }
  0x42   :  { %s2660_s0 = sld [smem:[#allocation3 + $0x98]]  ;;  %2324 = vlog2.f32 %v94_v18  ;;  %v2758_v50 = vstv %s2648_s25 }
  0x43   :  { %s2662_s9 = sld [smem:[#allocation3 + $0x90]]  ;;  %v2752_v48 = vstv %s2650_s13 }
  0x44   :  { %s2664_s6 = sld [smem:[#allocation3 + $0x80]]  ;;  %4197 = vst [vmem:[#allocation24_spill] sm:$0xff] %v2752_v48  ;;  %v2755_v49 = vstv %s2652_s12 }
  0x45   :  { %4184 = sst [smem:[#allocation15_spill]] %s2654_s11 }
  0x46   :  { %s2666_s5 = sld [smem:[#allocation3 + $0x88]]  ;;  %v2763_v53 = vstv %s2656_s10 }
  0x47   :  { %4185 = sst [smem:[#allocation16_spill]] %s2658_s7  ;;  %4198 = vst [vmem:[#allocation25_spill] sm:$0xff] %v2763_v53 }
  0x48   :  { %4186 = sst [smem:[#allocation17_spill]] %s2660_s0 }
  0x49   :  { %s2668_s2 = sld [smem:[#allocation3 + $0x91]]  ;;  %v2778_v58 = vstv %s2662_s9 }
  0x4a   :  { %4187 = sst [smem:[#allocation18_spill]] %s2664_s6 }
  0x4b   :  { %s2670_s11 = sld [smem:[#allocation3 + $0x81]] }
  0x4c   :  { %s2672_s7 = sld [smem:[#allocation3 + $0x89]]  ;;  %v2784_v63 = vstv %s2666_s5 }
  0x4d   :  { %s2675_s0 = sld [smem:[#allocation3 + $0x92]]  ;;  %v2321_v28 = vpop.eup %2320 }
  0x4e   :  { %s2683_s6 = sld [smem:[#allocation3 + $0x82]]  ;;  %v102_v33 = vmul.f32 0.6931472, %v2321_v28  ;;  %v2323_v38 = vpop.eup %2322 }
  0x4f   :  { %s2699_s21 = sld [smem:[#allocation3 + $0x8a]]  ;;  %v2325_v43 = vpop.eup %2324  ;;  %v100_v47 = vmul.f32 0.6931472, %v2323_v38  ;;  %v2787_v0 = vstv %s2668_s2 }
  0x50   :  { %s2713_s8 = sld [smem:[#allocation3 + $0x93]]  ;;  %v105_v44 = vadd.f32 %v102_v33, %v81_v19  ;;  %v98_v51 = vmul.f32 0.6931472, %v2325_v43 }
  0x51   :  { %s2727_s28 = sld [smem:[#allocation3 + $0x83]]  ;;  %v104_v59 = vadd.f32 %v100_v47, %v80_v22  ;;  %v2792_v2 = vstv %s2670_s11 }
  0x52   :  { %s4192_s4 = sld [smem:[#allocation16_spill]]  ;;  %v115_v52 = vmul.f32 %v1865_v34, %v105_v44  ;;  %v103_v60 = vadd.f32 %v98_v51, %v79_v23  ;;  %4202 = vst [vmem:[#allocation28_spill] sm:$0xff] %v2792_v2  ;;  %v2795_v3 = vstv %s2672_s7 }
  0x53   :  { %s4193_s3 = sld [smem:[#allocation15_spill]]  ;;  %v2801_v5 = vstv %s2675_s0  ;;  %v114_v12 = vmul.f32 %v1865_v34, %v104_v59 }
  0x54   :  { %s2741_s29 = sld [smem:[#allocation3 + $0x8b]]  ;;  %v118_v61 = vmul.f32 0.01, %v115_v52  ;;  %v2798_v4 = vstv %s2683_s6  ;;  %v113_v13 = vmul.f32 %v1865_v34, %v103_v60 }
  0x55   :  { %s4194_s30 = sld [smem:[#allocation17_spill]]  ;;  %v2808_v7 = vstv %s2699_s21  ;;  %v117_v47 = vmul.f32 0.01, %v114_v12 }
  0x56   :  { %s2749_s14 = sld [smem:[#allocation3 + $0x94]]  ;;  %v2814_v9 = vstv %s2713_s8  ;;  %v116_v51 = vmul.f32 0.01, %v113_v13 }
  0x57   :  { %s4196_s15 = sld [smem:[#allocation18_spill]]  ;;  %v2811_v8 = vstv %s2727_s28  ;;  %4203 = vst [vmem:[#allocation29_spill] sm:$0xff] %v2814_v9 }
  0x58   :  { %s2760_s1 = sld [smem:[#allocation3 + $0x84]]  ;;  %v2766_v54 = vstv %s4192_s4 }
  0x59   :  { %v2769_v55 = vstv %s4193_s3  ;;  %s4200_s16 = sld [smem:[#allocation37_spill]] }
  0x5a   :  { %4199 = vst [vmem:[#allocation26_spill] sm:$0xff] %v2769_v55  ;;  %s2789_s10 = sld [smem:[#allocation3 + $0x8c]]  ;;  %v2819_v10 = vstv %s2741_s29 }
  0x5b   :  { %v2775_v57 = vstv %s4194_s30  ;;  %s2803_s9 = sld [smem:[#allocation3 + $0x95]] }
  0x5c   :  { %s2816_s2 = sld [smem:[#allocation3 + $0x85]]  ;;  %v2822_v11 = vstv %s2749_s14 }
  0x5d   :  { %v2781_v62 = vstv %s4196_s15  ;;  %4204 = vst [vmem:[#allocation30_spill] sm:$0xff] %v2822_v11  ;;  %s2824_s5 = sld [smem:[#allocation3 + $0x8d]] }
  0x5e   :  { %4201 = vst [vmem:[#allocation27_spill] sm:$0xff] %v2781_v62  ;;  %s2834_s0 = sld [smem:[#allocation3 + $0x86]]  ;;  %v2843_v23 = vstv %s2760_s1 }
  0x5f   :  { %v75_v56 = vld [vmem:[%s4200_s16 + $0x10] sm:$0xff]  ;;  %4205 = vst [vmem:[#allocation31_spill] sm:$0xff] %v2843_v23  ;;  %s2845_s6 = sld [smem:[#allocation3 + $0x8e]] }
  0x60   :  { %v2805_v6 = vadd.f32 %v118_v61, %v75_v56  ;;  %s2852_s7 = sld [smem:[#allocation3 + $0x87]] }
  0x61   :  { %s2856_s11 = sld [smem:[#allocation3 + $0x96]] }
  0x62   :  { %v129_v14 = vmul.f32 %v2688_v24, %v2805_v6  ;;  %v150_v15 = vmul.f32 %v2694_v26, %v2805_v6  ;;  %v171_v16 = vmul.f32 %v2705_v30, %v2805_v6  ;;  %v192_v17 = vmul.f32 %v2719_v35, %v2805_v6  ;;  %s2864_s17 = sld [smem:[#allocation3 + $0x8f]] }
  0x63   :  { %v213_v18 = vmul.f32 %v2730_v39, %v2805_v6  ;;  %v234_v19 = vmul.f32 %v2744_v45, %v2805_v6  ;;  %v255_v22 = vmul.f32 %v2752_v48, %v2805_v6  ;;  %v276_v38 = vmul.f32 %v2763_v53, %v2805_v6  ;;  %s2871_s18 = sld [smem:[#allocation3 + $0x97]] }
  0x64   :  { %v134_v28 = vadd.f32 %v2691_v25, %v129_v14  ;;  %v155_v33 = vadd.f32 %v2702_v29, %v150_v15  ;;  %v176_v34 = vadd.f32 %v2708_v31, %v171_v16  ;;  %v197_v43 = vadd.f32 %v2722_v36, %v192_v17  ;;  %s4228_s21 = sld [smem:[#allocation38_spill]] }
  0x65   :  { %v218_v44 = vadd.f32 %v2733_v40, %v213_v18  ;;  %v299_v52 = vmul.f32 %v2781_v62, %v2805_v6  ;;  %v320_v56 = vmul.f32 %v2792_v2, %v2805_v6  ;;  %v341_v59 = vmul.f32 %v2798_v4, %v2805_v6  ;;  %s4229_s29 = sld [smem:[#allocation39_spill]] }
  0x66   :  { %2326 = vtanh.f32 %v134_v28  ;;  %v239_v60 = vadd.f32 %v2747_v46, %v234_v19  ;;  %v362_v61 = vmul.f32 %v2811_v8, %v2805_v6  ;;  %v383_v12 = vmul.f32 %v2843_v23, %v2805_v6  ;;  %s4231_s20 = sld [smem:[#allocation36_spill]] }
  0x67   :  { %2328 = vtanh.f32 %v155_v33  ;;  %v260_v13 = vadd.f32 %v2755_v49, %v255_v22  ;;  %v281_v14 = vadd.f32 %v2766_v54, %v276_v38  ;;  %v2876_v15 = vstv %s2789_s10  ;;  %s4240_s10 = sld [smem:[#allocation40_spill]] }
  0x68   :  { %2330 = vtanh.f32 %v176_v34  ;;  %4206 = vst [vmem:[#allocation32_spill] sm:$0xff] %v2876_v15  ;;  %v304_v16 = vadd.f32 %v2784_v63, %v299_v52  ;;  %v325_v17 = vadd.f32 %v2795_v3, %v320_v56  ;;  %v2881_v18 = vstv %s2816_s2  ;;  %s4241_s1 = sld [smem:[#allocation42_spill]] }
  0x69   :  { %2332 = vtanh.f32 %v197_v43  ;;  %4207 = vst [vmem:[#allocation33_spill] sm:$0xff] %v2881_v18  ;;  %v346_v19 = vadd.f32 %v2808_v7, %v341_v59  ;;  %v367_v22 = vadd.f32 %v2819_v10, %v362_v61  ;;  %v404_v28 = vmul.f32 %v2881_v18, %v2805_v6  ;;  %v74_v43 = vld [vmem:[%s4200_s16 + $0x8] sm:$0xff]  ;;  %v73_v59 = vld [vmem:[%s4200_s16] sm:$0xff]  ;;  %s2508_s16 = smov [#allocation8]  }
  0x6a   :  { %2334 = vtanh.f32 %v218_v44  ;;  %v388_v33 = vadd.f32 %v2876_v15, %v383_v12  ;;  %v2889_v34 = vstv %s2824_s5  ;;  %v2892_v38 = vstv %s2834_s0 }
  0x6b   :  { %2336 = vtanh.f32 %v239_v60  ;;  %4208 = vst [vmem:[#allocation34_spill] sm:$0xff] %v2892_v38  ;;  %v425_v44 = vmul.f32 %v2892_v38, %v2805_v6  ;;  %v2900_v52 = vstv %s2845_s6  ;;  %v2903_v56 = vstv %s2852_s7  ;;  %s4230_s7 = sld [smem:[#allocation41_spill]] }
  0x6c   :  { %2338 = vtanh.f32 %v260_v13  ;;  %v2909_v60 = vstv %s2803_s9  ;;  %v2912_v61 = vstv %s2856_s11  ;;  %v446_v12 = vmul.f32 %v2903_v56, %v2805_v6  ;;  %p1145_p10 = scmp.eq.s32.totalorder %s4231_s20, 1  ;;  %p1207_p11 = scmp.eq.s32.totalorder %s4231_s20, 2 }
  0x6d   :  { %2340 = vtanh.f32 %v281_v14  ;;  %4209 = vst [vmem:[#allocation35_spill] sm:$0xff] %v2912_v61  ;;  %v409_v13 = vadd.f32 %v2889_v34, %v404_v28  ;;  %v2918_v1 = vstv %s2864_s17  ;;  %v2920_v11 = vadd.f32 %v117_v47, %v74_v43  ;;  %p1269_p12 = scmp.eq.s32.totalorder %s4231_s20, 3  ;;  %p1331_p13 = scmp.eq.s32.totalorder %s4231_s20, 4 }
  0x6e   :  { %2342 = vtanh.f32 %v304_v16  ;;  %v430_v9 = vadd.f32 %v2900_v52, %v425_v44  ;;  %v2924_v55 = vstv %s2871_s18  ;;  %v2926_v14 = vadd.f32 %v116_v51, %v73_v59  ;;  %s1175_s28 = scalar_select %p1145_p10, 1, 0 }
  0x6f   :  { %2344 = vtanh.f32 %v325_v17  ;;  %v128_v61 = vmul.f32 %v2688_v24, %v2920_v11  ;;  %v149_v6 = vmul.f32 %v2694_v26, %v2920_v11  ;;  %v170_v16 = vmul.f32 %v2705_v30, %v2920_v11  ;;  %s1237_s4 = scalar_select %p1207_p11, 1, 0 }
  0x70   :  { %2346 = vtanh.f32 %v346_v19  ;;  %v451_v47 = vadd.f32 %v2918_v1, %v446_v12  ;;  %v191_v17 = vmul.f32 %v2719_v35, %v2920_v11  ;;  %v212_v51 = vmul.f32 %v2730_v39, %v2920_v11  ;;  %s1299_s3 = scalar_select %p1269_p12, 1, 0 }
  0x71   :  { %2348 = vtanh.f32 %v367_v22  ;;  %v133_v19 = vadd.f32 %v2691_v25, %v128_v61  ;;  %v154_v28 = vadd.f32 %v2702_v29, %v149_v6  ;;  %v233_v43 = vmul.f32 %v2744_v45, %v2920_v11  ;;  %s1332_s30 = scalar_select %p1331_p13, 1, 0 }
  0x72   :  { %2350 = vtanh.f32 %v388_v33  ;;  %v175_v22 = vadd.f32 %v2708_v31, %v170_v16  ;;  %v196_v59 = vadd.f32 %v2722_v36, %v191_v17  ;;  %v217_v12 = vadd.f32 %v2733_v40, %v212_v51  ;;  %s1841_s9 = sshll.u32 %s2508_s16, 4  ;;  %s1842_s9 = int_to_ptr.vmem [resolvable:$true] %s1841_s9 }
  0x73   :  { %v2327_v44 = vpop.eup %2326  ;;  %2352 = vtanh.f32 %v409_v13  ;;  %v254_v33 = vmul.f32 %v2752_v48, %v2920_v11  ;;  %v275_v61 = vmul.f32 %v2763_v53, %v2920_v11  ;;  %v298_v13 = vmul.f32 %v2781_v62, %v2920_v11  ;;  %s2454_s2 = scalar_lea.vmem %s1842_s9, 32  ;;  %p2459_p1 = scmp.lt.s32.totalorder %s1842_s9, %s1842_s9 }
  0x74   :  { %v2329_v35 = vpop.eup %2328  ;;  %v141_v30 = vmul.f32 %v2327_v44, %v2681_v21  ;;  %2354 = vtanh.f32 %v430_v9  ;;  %v319_v16 = vmul.f32 %v2792_v2, %v2920_v11  ;;  %v238_v44 = vadd.f32 %v2747_v46, %v233_v43  ;;  %p2455_p0 = scmp.ne.s32.totalorder %s1842_s9, %s2454_s2  ;;  %p2460_p2 = scmp.lt.s32.totalorder %s2454_s2, %s2454_s2 }
  0x75   :  { %v2331_v6 = vpop.eup %2330  ;;  %v162_v45 = vmul.f32 %v2329_v35, %v2697_v27  ;;  %2356 = vtanh.f32 %v451_v47  ;;  %v259_v35 = vadd.f32 %v2755_v49, %v254_v33  ;;  %v280_v47 = vadd.f32 %v2766_v54, %v275_v61 }
  0x76   :  { %v2333_v17 = vpop.eup %2332  ;;  %v144_v51 = vadd.f32 %v141_v30, %v2678_v20  ;;  %v183_v9 = vmul.f32 %v2331_v6, %v2711_v32  ;;  %2358 = vtanh.f32 %v133_v19  ;;  %v303_v30 = vadd.f32 %v2784_v63, %v298_v13  ;;  %p2461_p3 = por %p2460_p2, %p2459_p1 }
  0x77   :  { %v2335_v48 = vpop.eup %2334  ;;  %v204_v53 = vmul.f32 %v2333_v17, %v2725_v37  ;;  %2360 = vtanh.f32 %v154_v28  ;;  %v324_v19 = vadd.f32 %v2795_v3, %v319_v16  ;;  %v340_v43 = vmul.f32 %v2798_v4, %v2920_v11 }
  0x78   :  { %v2337_v62 = vpop.eup %2336  ;;  %v165_v40 = vadd.f32 %v162_v45, %v144_v51  ;;  %v225_v2 = vmul.f32 %v2335_v48, %v2736_v41  ;;  %2362 = vtanh.f32 %v175_v22  ;;  %v361_v28 = vmul.f32 %v2811_v8, %v2920_v11  ;;  %p2462_p4 = pnand %p2461_p3, %p2455_p0 }
  0x79   :  { %v2339_v36 = vpop.eup %2338  ;;  %2364 = vtanh.f32 %v196_v59  ;;  %v246_v61 = vmul.f32 %v2337_v62, %v2739_v42  ;;  %v382_v45 = vmul.f32 %v2843_v23, %v2920_v11  ;;  %v345_v59 = vadd.f32 %v2808_v7, %v340_v43 }
  0x7a   :  { %v2341_v33 = vpop.eup %2340  ;;  %v186_v6 = vadd.f32 %v183_v9, %v165_v40  ;;  %2366 = vtanh.f32 %v217_v12  ;;  %v267_v22 = vmul.f32 %v2339_v36, %v2758_v50  ;;  %v366_v13 = vadd.f32 %v2819_v10, %v361_v28 }
  0x7b   :  { %v2343_v48 = vpop.eup %2342  ;;  %2368 = vtanh.f32 %v238_v44  ;;  %v387_v40 = vadd.f32 %v2876_v15, %v382_v45  ;;  %v403_v9 = vmul.f32 %v2881_v18, %v2920_v11  ;;  %v424_v36 = vmul.f32 %v2892_v38, %v2920_v11 }
  0x7c   :  { %v2345_v16 = vpop.eup %2344  ;;  %v207_v17 = vadd.f32 %v204_v53, %v186_v6  ;;  %v311_v51 = vmul.f32 %v2343_v48, %v2778_v58  ;;  %2370 = vtanh.f32 %v259_v35  ;;  %v4210_v6 = vld [vmem:[#allocation26_spill] sm:$0xff]  ;;  %v4211_v48 = vld [vmem:[#allocation29_spill] sm:$0xff] }
  0x7d   :  { %v2347_v62 = vpop.eup %2346  ;;  %v332_v12 = vmul.f32 %v2345_v16, %v2787_v0  ;;  %2372 = vtanh.f32 %v280_v47  ;;  %v288_v45 = vmul.f32 %v2341_v33, %v4210_v6  ;;  %v408_v47 = vadd.f32 %v2889_v34, %v403_v9 }
  0x7e   :  { %v2349_v44 = vpop.eup %2348  ;;  %v228_v43 = vadd.f32 %v225_v2, %v207_v17  ;;  %v314_v28 = vadd.f32 %v311_v51, %v2775_v57  ;;  %v353_v53 = vmul.f32 %v2347_v62, %v2801_v5  ;;  %2374 = vtanh.f32 %v303_v30  ;;  %v4212_v17 = vld [vmem:[#allocation30_spill] sm:$0xff] }
  0x7f   :  { %v2351_v35 = vpop.eup %2350  ;;  %v374_v15 = vmul.f32 %v2349_v44, %v4211_v48  ;;  %2376 = vtanh.f32 %v324_v19  ;;  %v429_v38 = vadd.f32 %v2900_v52, %v424_v36  ;;  %v445_v30 = vmul.f32 %v2903_v56, %v2920_v11 }
  0x80   :  { %v2353_v16 = vpop.eup %2352  ;;  %v249_v18 = vadd.f32 %v246_v61, %v228_v43  ;;  %v335_v23 = vadd.f32 %v332_v12, %v314_v28  ;;  %2378 = vtanh.f32 %v345_v59  ;;  %v395_v51 = vmul.f32 %v2351_v35, %v4212_v17  ;;  %v4213_v59 = vld [vmem:[#allocation35_spill] sm:$0xff] }
  0x81   :  { %v2355_v2 = vpop.eup %2354  ;;  %2380 = vtanh.f32 %v366_v13  ;;  %v127_v33 = vmul.f32 %v2688_v24, %v2926_v14  ;;  %v416_v9 = vmul.f32 %v2353_v16, %v2909_v60  ;;  %v450_v36 = vadd.f32 %v2918_v1, %v445_v30 }
  0x82   :  { %v2357_v62 = vpop.eup %2356  ;;  %v270_v19 = vadd.f32 %v267_v22, %v249_v18  ;;  %v356_v44 = vadd.f32 %v353_v53, %v335_v23  ;;  %2382 = vtanh.f32 %v387_v40  ;;  %v437_v12 = vmul.f32 %v2355_v2, %v4213_v59  ;;  %v4214_v40 = vld [vmem:[#allocation19_spill] sm:$0xff] }
  0x83   :  { %v2359_v61 = vpop.eup %2358  ;;  %2384 = vtanh.f32 %v408_v47  ;;  %v132_v13 = vadd.f32 %v2691_v25, %v127_v33  ;;  %v458_v23 = vmul.f32 %v2357_v62, %v2924_v55  ;;  %v148_v22 = vmul.f32 %v2694_v26, %v2926_v14  ;;  %v4216_v26 = vld [vmem:[#allocation20_spill] sm:$0xff] }
  0x84   :  { %v2361_v43 = vpop.eup %2360  ;;  %v291_v28 = vadd.f32 %v288_v45, %v270_v19  ;;  %v377_v11 = vadd.f32 %v374_v15, %v356_v44  ;;  %v140_v35 = vmul.f32 %v2359_v61, %v2681_v21  ;;  %2386 = vtanh.f32 %v429_v38 }
  0x85   :  { %v2363_v24 = vpop.eup %2362  ;;  %v161_v18 = vmul.f32 %v2361_v43, %v2697_v27  ;;  %v169_v53 = vmul.f32 %v4214_v40, %v2926_v14  ;;  %2388 = vtanh.f32 %v132_v13  ;;  %v4215_v16 = vmov 0.0  }
  0x86   :  { %v2365_v47 = vpop.eup %2364  ;;  %2084 = vmatpush3.msra.mxu0 %v291_v28  ;;  %v398_v25 = vadd.f32 %v395_v51, %v377_v11  ;;  %v143_v45 = vadd.f32 %v140_v35, %v2678_v20  ;;  %v182_v15 = vmul.f32 %v2363_v24, %v2711_v32  ;;  %2390 = vtanh.f32 %v450_v36  ;;  %v4217_v36 = vld [vmem:[#allocation21_spill] sm:$0xff] }
  0x87   :  { %v2367_v38 = vpop.eup %2366  ;;  %2085 = vmatprep.subr.mxu0 %v4215_v16  ;;  %v153_v2 = vadd.f32 %v2702_v29, %v148_v22  ;;  %v174_v30 = vadd.f32 %v2708_v31, %v169_v53  ;;  %v190_v33 = vmul.f32 %v4216_v26, %v2926_v14  ;;  %v203_v51 = vmul.f32 %v2365_v47, %v2725_v37  ;;  %v4218_v29 = vld [vmem:[#allocation23_spill] sm:$0xff] }
  0x88   :  { %v2369_v62 = vpop.eup %2368  ;;  %v419_v19 = vadd.f32 %v416_v9, %v398_v25  ;;  %v164_v44 = vadd.f32 %v161_v18, %v143_v45  ;;  %v211_v61 = vmul.f32 %v2730_v39, %v2926_v14  ;;  %v224_v43 = vmul.f32 %v2367_v38, %v2736_v41  ;;  %v4219_v39 = vld [vmem:[#allocation22_spill] sm:$0xff] }
  0x89   :  { %v2371_v13 = vpop.eup %2370  ;;  %2392 = vtanh.f32 %v153_v2  ;;  %v195_v28 = vadd.f32 %v4217_v36, %v190_v33  ;;  %v232_v31 = vmul.f32 %v4218_v29, %v2926_v14  ;;  %v245_v9 = vmul.f32 %v2369_v62, %v2739_v42  ;;  %v4220_v2 = vld [vmem:[#allocation24_spill] sm:$0xff]  ;;  %v4222_v62 = vld [vmem:[#allocation27_spill] sm:$0xff] }
  0x8a   :  { %v2373_v11 = vpop.eup %2372  ;;  %v440_v35 = vadd.f32 %v437_v12, %v419_v19  ;;  %v185_v24 = vadd.f32 %v182_v15, %v164_v44  ;;  %2394 = vtanh.f32 %v174_v30  ;;  %v266_v22 = vmul.f32 %v2371_v13, %v2758_v50  ;;  %v4221_v30 = vld [vmem:[#allocation25_spill] sm:$0xff] }
  0x8b   :  { %v2375_v18 = vpop.eup %2374  ;;  %2396 = vtanh.f32 %v195_v28  ;;  %v216_v40 = vadd.f32 %v4219_v39, %v211_v61  ;;  %v237_v53 = vadd.f32 %v2747_v46, %v232_v31  ;;  %v253_v12 = vmul.f32 %v4220_v2, %v2926_v14 }
  0x8c   :  { %v2377_v47 = vpop.eup %2376  ;;  %v461_v25 = vadd.f32 %v458_v23, %v440_v35  ;;  %v206_v45 = vadd.f32 %v203_v51, %v185_v24  ;;  %v310_v38 = vmul.f32 %v2375_v18, %v2778_v58  ;;  %v274_v33 = vmul.f32 %v4221_v30, %v2926_v14  ;;  %v4223_v18 = vld [vmem:[#allocation28_spill] sm:$0xff]  ;;  %v4225_v30 = vld [vmem:[#allocation33_spill] sm:$0xff] }
  0x8d   :  { %v2379_v15 = vpop.eup %2378  ;;  %v331_v26 = vmul.f32 %v2377_v47, %v2787_v0  ;;  %2398 = vtanh.f32 %v216_v40  ;;  %v297_v19 = vmul.f32 %v4222_v62, %v2926_v14  ;;  %v287_v13 = vmul.f32 %v2373_v11, %v4210_v6  ;;  %v4226_v62 = vld [vmem:[#allocation34_spill] sm:$0xff] }
  0x8e   :  { %v2381_v44 = vpop.eup %2380  ;;  %2177 = vmatpush3.msra.mxu1 %v461_v25  ;;  %v227_v46 = vadd.f32 %v224_v43, %v206_v45  ;;  %v313_v23 = vadd.f32 %v310_v38, %v2775_v57  ;;  %v352_v51 = vmul.f32 %v2379_v15, %v2801_v5  ;;  %2400 = vtanh.f32 %v237_v53 }
  0x8f   :  { %v2383_v61 = vpop.eup %2382  ;;  %2178 = vmatprep.subr.mxu1 %v4215_v16  ;;  %v258_v36 = vadd.f32 %v2755_v49, %v253_v12  ;;  %v279_v28 = vadd.f32 %v2766_v54, %v274_v33  ;;  %v302_v29 = vadd.f32 %v2784_v63, %v297_v19  ;;  %v373_v43 = vmul.f32 %v2381_v44, %v4211_v48 }
  0x90   :  { %v2385_v31 = vpop.eup %2384  ;;  %v248_v35 = vadd.f32 %v245_v9, %v227_v46  ;;  %v334_v24 = vadd.f32 %v331_v26, %v313_v23  ;;  %v318_v39 = vmul.f32 %v4223_v18, %v2926_v14  ;;  %v394_v53 = vmul.f32 %v2383_v61, %v4212_v17  ;;  %v4227_v23 = vld [vmem:[#allocation32_spill] sm:$0xff] }
  0x91   :  { %v2387_v40 = vpop.eup %2386  ;;  %2402 = vtanh.f32 %v258_v36  ;;  %v339_v11 = vmul.f32 %v2798_v4, %v2926_v14  ;;  %v360_v49 = vmul.f32 %v2811_v8, %v2926_v14  ;;  %v415_v9 = vmul.f32 %v2385_v31, %v2909_v60 }
  0x92   :  { %v269_v54 = vadd.f32 %v266_v22, %v248_v35  ;;  %v355_v63 = vadd.f32 %v352_v51, %v334_v24  ;;  %2404 = vtanh.f32 %v279_v28  ;;  %v2389_v47 = vpop.eup %2388  ;;  %v436_v25 = vmul.f32 %v2387_v40, %v4213_v59  ;;  %v4224_v22 = vld [vmem:[#allocation31_spill] sm:$0xff] }
  0x93   :  { %2406 = vtanh.f32 %v302_v29  ;;  %v323_v45 = vadd.f32 %v2795_v3, %v318_v39  ;;  %v344_v38 = vadd.f32 %v2808_v7, %v339_v11  ;;  %v2391_v2 = vpop.eup %2390  ;;  %v139_v4 = vmul.f32 %v2389_v47, %v2681_v21 }
  0x94   :  { %v290_v12 = vadd.f32 %v287_v13, %v269_v54  ;;  %v376_v15 = vadd.f32 %v373_v43, %v355_v63  ;;  %v365_v8 = vadd.f32 %v2819_v10, %v360_v49  ;;  %v381_v26 = vmul.f32 %v4224_v22, %v2926_v14 }
  0x95   :  { %2408 = vtanh.f32 %v323_v45  ;;  %v402_v33 = vmul.f32 %v4225_v30, %v2926_v14  ;;  %v423_v19 = vmul.f32 %v4226_v62, %v2926_v14  ;;  %v142_v44 = vadd.f32 %v139_v4, %v2678_v20 }
  0x96   :  { %v2393_v3 = vpop.eup %2392  ;;  %2086 = vmatpush3.msra.mxu0 %v290_v12  ;;  %v397_v7 = vadd.f32 %v394_v53, %v376_v15  ;;  %2410 = vtanh.f32 %v344_v38  ;;  %v444_v21 = vmul.f32 %v2903_v56, %v2926_v14  ;;  %v386_v51 = vadd.f32 %v4227_v23, %v381_v26  ;;  %v469_v23 = vld [vmem:[%s4228_s21 + $0x38] sm:$0xff] }
  0x97   :  { %v2395_v10 = vpop.eup %2394  ;;  %2087 = vmatprep.subr.mxu0 %v4215_v16  ;;  %v160_v46 = vmul.f32 %v2393_v3, %v2697_v27  ;;  %2412 = vtanh.f32 %v365_v8  ;;  %v407_v61 = vadd.f32 %v2889_v34, %v402_v33  ;;  %v457_v28 = vmul.f32 %v2391_v2, %v2924_v55  ;;  %v466_v3 = vld [vmem:[%s4228_s21 + $0x20] sm:$0xff] }
  0x98   :  { %v2397_v13 = vpop.eup %2396  ;;  %v418_v36 = vadd.f32 %v415_v9, %v397_v7  ;;  %v181_v20 = vmul.f32 %v2395_v10, %v2711_v32  ;;  %v428_v29 = vadd.f32 %v2900_v52, %v423_v19  ;;  %2414 = vtanh.f32 %v386_v51  ;;  %v790_v19 = vld [vmem:[%s4229_s29 + $0x8] sm:$0xff]  ;;  %v791_v7 = vld [vmem:[%s4229_s29 + $0x10] sm:$0xff] }
  0x99   :  { %v163_v31 = vadd.f32 %v160_v46, %v142_v44  ;;  %v202_v56 = vmul.f32 %v2397_v13, %v2725_v37  ;;  %v449_v14 = vadd.f32 %v2918_v1, %v444_v21  ;;  %2416 = vtanh.f32 %v407_v61  ;;  %v467_v44 = vld [vmem:[%s4228_s21 + $0x28] sm:$0xff]  ;;  %v792_v21 = vld [vmem:[%s4229_s29 + $0x18] sm:$0xff]  ;;  %v468_v10 = vld [vmem:[%s4228_s21 + $0x30] sm:$0xff] }
  0x9a   :  { %v2399_v27 = vpop.eup %2398  ;;  %v439_v35 = vadd.f32 %v436_v25, %v418_v36  ;;  %2418 = vtanh.f32 %v428_v29  ;;  %v793_v46 = vld [vmem:[%s4229_s29 + $0x20] sm:$0xff]  ;;  %v794_v51 = vld [vmem:[%s4229_s29 + $0x28] sm:$0xff]  ;;  %v795_v13 = vld [vmem:[%s4229_s29 + $0x30] sm:$0xff] }
  0x9b   :  { %v2401_v24 = vpop.eup %2400  ;;  %v184_v43 = vadd.f32 %v181_v20, %v163_v31  ;;  %v223_v34 = vmul.f32 %v2399_v27, %v2736_v41  ;;  %2420 = vtanh.f32 %v449_v14  ;;  %v470_v61 = vld [vmem:[%s4228_s21 + $0x40] sm:$0xff]  ;;  %v471_v36 = vld [vmem:[%s4228_s21 + $0x48] sm:$0xff]  ;;  %v472_v20 = vld [vmem:[%s4228_s21 + $0x50] sm:$0xff] }
  0x9c   :  { %v460_v18 = vadd.f32 %v457_v28, %v439_v35  ;;  %v244_v32 = vmul.f32 %v2401_v24, %v2739_v42  ;;  %v796_v28 = vld [vmem:[%s4229_s29 + $0x38] sm:$0xff]  ;;  %v797_v29 = vld [vmem:[%s4229_s29 + $0x40] sm:$0xff]  ;;  %v799_v27 = vld [vmem:[%s4229_s29 + $0x50] sm:$0xff] }
  0x9d   :  { %v205_v39 = vadd.f32 %v202_v56, %v184_v43  ;;  %v473_v31 = vld [vmem:[%s4228_s21 + $0x58] sm:$0xff]  ;;  %v798_v56 = vld [vmem:[%s4229_s29 + $0x48] sm:$0xff]  ;;  %v474_v14 = vld [vmem:[%s4228_s21 + $0x60] sm:$0xff] }
  0x9e   :  { %v2403_v52 = vpop.eup %2402  ;;  %2179 = vmatpush3.msra.mxu1 %v460_v18  ;;  %v475_v35 = vld [vmem:[%s4228_s21 + $0x68] sm:$0xff]  ;;  %v800_v24 = vld [vmem:[%s4229_s29 + $0x58] sm:$0xff]  ;;  %v476_v43 = vld [vmem:[%s4228_s21 + $0x70] sm:$0xff] }
  0x9f   :  { %v2405_v40 = vpop.eup %2404  ;;  %2180 = vmatprep.subr.mxu1 %v4215_v16  ;;  %v226_v37 = vadd.f32 %v223_v34, %v205_v39  ;;  %v265_v1 = vmul.f32 %v2403_v52, %v2758_v50  ;;  %v801_v34 = vld [vmem:[%s4229_s29 + $0x60] sm:$0xff]  ;;  %v477_v18 = vld [vmem:[%s4228_s21 + $0x78] sm:$0xff]  ;;  %v802_v39 = vld [vmem:[%s4229_s29 + $0x68] sm:$0xff] }
  0xa0   :  { %v2407_v53 = vpop.eup %2406  ;;  %v286_v49 = vmul.f32 %v2405_v40, %v4210_v6  ;;  %v462_v6 = vld [vmem:[%s4228_s21] sm:$0xff]  ;;  %v803_v52 = vld [vmem:[%s4229_s29 + $0x70] sm:$0xff]  ;;  %v479_v40 = vld [vmem:[%s4228_s21 + $0x88] sm:$0xff] }
  0xa1   :  { %v247_v11 = vadd.f32 %v244_v32, %v226_v37  ;;  %v309_v41 = vmul.f32 %v2407_v53, %v2778_v58  ;;  %v478_v32 = vld [vmem:[%s4228_s21 + $0x80] sm:$0xff]  ;;  %v804_v37 = vld [vmem:[%s4229_s29 + $0x78] sm:$0xff] }
  0xa2   :  { %v2409_v54 = vpop.eup %2408  ;;  %v805_v53 = vld [vmem:[%s4229_s29 + $0x80] sm:$0xff] }
  0xa3   :  { %v2411_v63 = vpop.eup %2410  ;;  %v268_v9 = vadd.f32 %v265_v1, %v247_v11  ;;  %v312_v42 = vadd.f32 %v309_v41, %v2775_v57  ;;  %v330_v47 = vmul.f32 %v2409_v54, %v2787_v0  ;;  %v480_v1 = vld [vmem:[%s4228_s21 + $0x90] sm:$0xff]  ;;  %v481_v11 = vld [vmem:[%s4228_s21 + $0x98] sm:$0xff]  ;;  %v482_v41 = vld [vmem:[%s4228_s21 + $0xa0] sm:$0xff] }
  0xa4   :  { %v2413_v25 = vpop.eup %2412  ;;  %v351_v45 = vmul.f32 %v2411_v63, %v2801_v5  ;;  %v807_v54 = vld [vmem:[%s4229_s29 + $0x90] sm:$0xff]  ;;  %v483_v63 = vld [vmem:[%s4228_s21 + $0xa8] sm:$0xff] }
  0xa5   :  { %v289_v38 = vadd.f32 %v286_v49, %v268_v9  ;;  %v333_v2 = vadd.f32 %v330_v47, %v312_v42  ;;  %v372_v50 = vmul.f32 %v2413_v25, %v4211_v48  ;;  %v2415_v58 = vpop.eup %2414  ;;  %v463_v48 = vld [vmem:[%s4228_s21 + $0x8] sm:$0xff]  ;;  %v808_v9 = vld [vmem:[%s4229_s29 + $0x98] sm:$0xff]  ;;  %v484_v42 = vld [vmem:[%s4228_s21 + $0xb0] sm:$0xff] }
  0xa6   :  { %v2417_v12 = vpop.eup %2416  ;;  %v393_v57 = vmul.f32 %v2415_v58, %v4212_v17  ;;  %v806_v49 = vld [vmem:[%s4229_s29 + $0x88] sm:$0xff]  ;;  %v809_v47 = vld [vmem:[%s4229_s29 + $0xa0] sm:$0xff]  ;;  %v485_v25 = vld [vmem:[%s4228_s21 + $0xb8] sm:$0xff] }
  0xa7   :  { %2088 = vmatpush3.msra.mxu0 %v289_v38  ;;  %v354_v15 = vadd.f32 %v351_v45, %v333_v2  ;;  %v2419_v4 = vpop.eup %2418  ;;  %v414_v5 = vmul.f32 %v2417_v12, %v2909_v60  ;;  %v464_v60 = vld [vmem:[%s4228_s21 + $0x10] sm:$0xff]  ;;  %v810_v45 = vld [vmem:[%s4229_s29 + $0xa8] sm:$0xff]  ;;  %v486_v38 = vld [vmem:[%s4228_s21 + $0xc0] sm:$0xff] }
  0xa8   :  { %2090 = vmatmul.mubr.msk.f32.vlgmr.msra.gmra.mxu0 %vm491_vm1, %v462_v6  ;;  %2269 = vmatprep.subr.mxu0 %v4215_v16  ;;  %v2421_v8 = vpop.eup %2420  ;;  %v435_v26 = vmul.f32 %v2419_v4, %v4213_v59  ;;  %v789_v59 = vld [vmem:[%s4229_s29] sm:$0xff]  ;;  %v811_v2 = vld [vmem:[%s4229_s29 + $0xb0] sm:$0xff]  ;;  %v812_v6 = vld [vmem:[%s4229_s29 + $0xb8] sm:$0xff] }
  0xa9   :  { %v375_v0 = vadd.f32 %v372_v50, %v354_v15  ;;  %2092 = vmatprep.mubr.msk.f32.mxu0 %vm2507_vm0, %v4215_v16  ;;  %v456_v30 = vmul.f32 %v2421_v8, %v2924_v55  ;;  %v465_v55 = vld [vmem:[%s4228_s21 + $0x18] sm:$0xff]  ;;  %v487_v50 = vld [vmem:[%s4228_s21 + $0xc8] sm:$0xff]  ;;  %v488_v58 = vld [vmem:[%s4228_s21 + $0xd0] sm:$0xff] }
  0xaa   :  { %v813_v12 = vld [vmem:[%s4229_s29 + $0xc0] sm:$0xff]  ;;  %v489_v15 = vld [vmem:[%s4228_s21 + $0xd8] sm:$0xff]  ;;  %v814_v4 = vld [vmem:[%s4229_s29 + $0xc8] sm:$0xff] }
  0xab   :  { %v396_v22 = vadd.f32 %v393_v57, %v375_v0  ;;  %v1741_v57 = vld [vmem:[%s4230_s7 + $0x78] sm:$0xff]  ;;  %v490_v0 = vld [vmem:[%s4228_s21 + $0xe0] sm:$0xff] }
  0xac   :  { %2093 = vmatmul.mubr.msk.f32.gmra.mxu0 %vm491_vm1, %v463_v48  ;;  %v1740_v48 = vld [vmem:[%s4230_s7 + $0x70] sm:$0xff]  ;;  %v816_v8 = vld [vmem:[%s4229_s29 + $0xd8] sm:$0xff] }
  0xad   :  { %v417_v17 = vadd.f32 %v414_v5, %v396_v22  ;;  %2095 = vmatprep.mubr.msk.f32.mxu0 %vm2507_vm0, %v4215_v16  ;;  %2270 = vmatpush3.msra.mxu0 %v1741_v57  ;;  %v815_v5 = vld [vmem:[%s4229_s29 + $0xd0] sm:$0xff]  ;;  %v817_v22 = vld [vmem:[%s4229_s29 + $0xe0] sm:$0xff]  ;;  %v1423_v57 = vld [vmem:[#allocation7 + $0x8] sm:$0xff] }
  0xae   :  { %2271 = vmatprep.subr.mxu0 %v4215_v16 }
  0xaf   :  { %v438_v33 = vadd.f32 %v435_v26, %v417_v17  ;;  %2272 = vmatpush3.msra.mxu0 %v1740_v48  ;;  %v1739_v26 = vld [vmem:[%s4230_s7 + $0x68] sm:$0xff]  ;;  %v1738_v17 = vld [vmem:[%s4230_s7 + $0x60] sm:$0xff]  ;;  %v1570_v48 = vld [vmem:[#allocation7 + $0xf0] sm:$0xff] }
  0xb0   :  { %2096 = vmatmul.mubr.msk.f32.gmra.mxu0 %vm491_vm1, %v464_v60  ;;  %2273 = vmatprep.subr.mxu0 %v4215_v16  ;;  %v1736_v60 = vld [vmem:[%s4230_s7 + $0x50] sm:$0xff] }
  0xb1   :  { %v459_v62 = vadd.f32 %v456_v30, %v438_v33  ;;  %2098 = vmatprep.mubr.msk.f32.mxu0 %vm2507_vm0, %v4215_v16  ;;  %2274 = vmatpush3.msra.mxu0 %v1739_v26  ;;  %v1737_v30 = vld [vmem:[%s4230_s7 + $0x58] sm:$0xff]  ;;  %v1735_v33 = vld [vmem:[%s4230_s7 + $0x48] sm:$0xff] }
  0xb2   :  { %2275 = vmatprep.subr.mxu0 %v4215_v16 }
  0xb3   :  { %2181 = vmatpush3.msra.mxu1 %v459_v62  ;;  %2276 = vmatpush3.msra.mxu0 %v1738_v17  ;;  %v1734_v62 = vld [vmem:[%s4230_s7 + $0x40] sm:$0xff] }
  0xb4   :  { %2183 = vmatmul.mubr.msk.f32.vlgmr.msra.gmra.mxu1 %vm491_vm1, %v789_v59  ;;  %2099 = vmatmul.mubr.msk.f32.gmra.mxu0 %vm491_vm1, %v465_v55  ;;  %v1733_v59 = vld [vmem:[%s4230_s7 + $0x38] sm:$0xff]  ;;  %v1732_v55 = vld [vmem:[%s4230_s7 + $0x30] sm:$0xff] }
  0xb5   :  { %2185 = vmatprep.mubr.msk.f32.mxu1 %vm2507_vm0, %v4215_v16  ;;  %2101 = vmatprep.mubr.msk.f32.mxu0 %vm2507_vm0, %v4215_v16 }
  0xb6   :  { %2277 = vmatprep.subr.mxu0 %v4215_v16 }
  0xb7   :  { %2278 = vmatpush3.msra.mxu0 %v1737_v30 }
  0xb8   :  { %2186 = vmatmul.mubr.msk.f32.gmra.mxu1 %vm491_vm1, %v790_v19  ;;  %2102 = vmatmul.mubr.msk.f32.gmra.mxu0 %vm491_vm1, %v466_v3  ;;  %v1731_v19 = vld [vmem:[%s4230_s7 + $0x28] sm:$0xff]  ;;  %v1730_v3 = vld [vmem:[%s4230_s7 + $0x20] sm:$0xff] }
  0xb9   :  { %2188 = vmatprep.mubr.msk.f32.mxu1 %vm2507_vm0, %v4215_v16  ;;  %2104 = vmatprep.mubr.msk.f32.mxu0 %vm2507_vm0, %v4215_v16 }
  0xba   :  { %2279 = vmatprep.subr.mxu0 %v4215_v16 }
  0xbb   :  { %2280 = vmatpush3.msra.mxu0 %v1736_v60 }
  0xbc   :  { %2189 = vmatmul.mubr.msk.f32.gmra.mxu1 %vm491_vm1, %v791_v7  ;;  %2105 = vmatmul.mubr.msk.f32.gmra.mxu0 %vm491_vm1, %v467_v44 }
  0xbd   :  { %2191 = vmatprep.mubr.msk.f32.mxu1 %vm2507_vm0, %v4215_v16  ;;  %2107 = vmatprep.mubr.msk.f32.mxu0 %vm2507_vm0, %v4215_v16 }
  0xbe   :  { %2281 = vmatprep.subr.mxu0 %v4215_v16 }
  0xbf   :  { %2282 = vmatpush3.msra.mxu0 %v1735_v33 }
  0xc0   :  { %2192 = vmatmul.mubr.msk.f32.gmra.mxu1 %vm491_vm1, %v792_v21  ;;  %2108 = vmatmul.mubr.msk.f32.gmra.mxu0 %vm491_vm1, %v468_v10  ;;  %v1729_v10 = vld [vmem:[%s4230_s7 + $0x18] sm:$0xff] }
  0xc1   :  { %2194 = vmatprep.mubr.msk.f32.mxu1 %vm2507_vm0, %v4215_v16  ;;  %2110 = vmatprep.mubr.msk.f32.mxu0 %vm2507_vm0, %v4215_v16 }
  0xc2   :  { %2283 = vmatprep.subr.mxu0 %v4215_v16 }
  0xc3   :  { %2284 = vmatpush3.msra.mxu0 %v1734_v62 }
  0xc4   :  { %2195 = vmatmul.mubr.msk.f32.gmra.mxu1 %vm491_vm1, %v793_v46  ;;  %2111 = vmatmul.mubr.msk.f32.gmra.mxu0 %vm491_vm1, %v469_v23 }
  0xc5   :  { %2197 = vmatprep.mubr.msk.f32.mxu1 %vm2507_vm0, %v4215_v16  ;;  %2113 = vmatprep.mubr.msk.f32.mxu0 %vm2507_vm0, %v4215_v16 }
  0xc6   :  { %2285 = vmatprep.subr.mxu0 %v4215_v16 }
  0xc7   :  { %2286 = vmatpush3.msra.mxu0 %v1733_v59 }
  0xc8   :  { %2198 = vmatmul.mubr.msk.f32.gmra.mxu1 %vm491_vm1, %v794_v51  ;;  %2114 = vmatmul.mubr.msk.f32.gmra.mxu0 %vm491_vm1, %v470_v61  ;;  %v1728_v51 = vld [vmem:[%s4230_s7 + $0x10] sm:$0xff]  ;;  %v1727_v61 = vld [vmem:[%s4230_s7 + $0x8] sm:$0xff] }
  0xc9   :  { %2200 = vmatprep.mubr.msk.f32.mxu1 %vm2507_vm0, %v4215_v16  ;;  %2116 = vmatprep.mubr.msk.f32.mxu0 %vm2507_vm0, %v4215_v16 }
  0xca   :  { %2287 = vmatprep.subr.mxu0 %v4215_v16 }
  0xcb   :  { %2288 = vmatpush3.msra.mxu0 %v1732_v55 }
  0xcc   :  { %2201 = vmatmul.mubr.msk.f32.gmra.mxu1 %vm491_vm1, %v795_v13  ;;  %2117 = vmatmul.mubr.msk.f32.gmra.mxu0 %vm491_vm1, %v471_v36  ;;  %v1176_v13 = vstv %s1175_s28  ;;  %v1238_v36 = vstv %s1237_s4 }
  0xcd   :  { %2203 = vmatprep.mubr.msk.f32.mxu1 %vm2507_vm0, %v4215_v16  ;;  %2119 = vmatprep.mubr.msk.f32.mxu0 %vm2507_vm0, %v4215_v16  ;;  %vm3508_vm2 = vcmp.eq.s32.totalorder %v1176_v13, 1  ;;  %vm3515_vm3 = vcmp.eq.s32.totalorder %v1238_v36, 1  ;;  %v1571_v13 = vld [vmem:[#allocation7 + $0xf8] sm:$0xff] }
  0xce   :  { %2289 = vmatprep.subr.mxu0 %v4215_v16 }
  0xcf   :  { %2290 = vmatpush3.msra.mxu0 %v1731_v19 }
  0xd0   :  { %2204 = vmatmul.mubr.msk.f32.gmra.mxu1 %vm491_vm1, %v796_v28  ;;  %2120 = vmatmul.mubr.msk.f32.gmra.mxu0 %vm491_vm1, %v472_v20  ;;  %v1726_v20 = vld [vmem:[%s4230_s7] sm:$0xff]  ;;  %s4242_s7 = sld [smem:[#allocation43_spill]] }
  0xd1   :  { %2206 = vmatprep.mubr.msk.f32.mxu1 %vm2507_vm0, %v4215_v16  ;;  %2122 = vmatprep.mubr.msk.f32.mxu0 %vm2507_vm0, %v4215_v16 }
  0xd2   :  { %2291 = vmatprep.subr.mxu0 %v4215_v16 }
  0xd3   :  { %2292 = vmatpush3.msra.mxu0 %v1730_v3 }
  0xd4   :  { %2207 = vmatmul.mubr.msk.f32.gmra.mxu1 %vm491_vm1, %v797_v29  ;;  %2123 = vmatmul.mubr.msk.f32.gmra.mxu0 %vm491_vm1, %v473_v31  ;;  %v1300_v29 = vstv %s1299_s3 }
  0xd5   :  { %2209 = vmatprep.mubr.msk.f32.mxu1 %vm2507_vm0, %v4215_v16  ;;  %2125 = vmatprep.mubr.msk.f32.mxu0 %vm2507_vm0, %v4215_v16  ;;  %vm3519_vm4 = vcmp.eq.s32.totalorder %v1300_v29, 1 }
  0xd6   :  { %2293 = vmatprep.subr.mxu0 %v4215_v16 }
  0xd7   :  { %2294 = vmatpush3.msra.mxu0 %v1729_v10 }
  0xd8   :  { %2210 = vmatmul.mubr.msk.f32.gmra.mxu1 %vm491_vm1, %v798_v56  ;;  %2126 = vmatmul.mubr.msk.f32.gmra.mxu0 %vm491_vm1, %v474_v14  ;;  %v1333_v14 = vstv %s1332_s30  ;;  %v2001_v56 = vld [vmem:[%s4240_s10 + $0x1c8] sm:$0xff] }
  0xd9   :  { %2212 = vmatprep.mubr.msk.f32.mxu1 %vm2507_vm0, %v4215_v16  ;;  %2128 = vmatprep.mubr.msk.f32.mxu0 %vm2507_vm0, %v4215_v16  ;;  %vm3525_vm5 = vcmp.eq.s32.totalorder %v1333_v14, 1  ;;  %v1975_v14 = vld [vmem:[%s4240_s10 + $0xf8] sm:$0xff] }
  0xda   :  { %2295 = vmatprep.subr.mxu0 %v4215_v16 }
  0xdb   :  { %2296 = vmatpush3.msra.mxu0 %v1728_v51 }
  0xdc   :  { %2213 = vmatmul.mubr.msk.f32.gmra.mxu1 %vm491_vm1, %v799_v27  ;;  %2129 = vmatmul.mubr.msk.f32.gmra.mxu0 %vm491_vm1, %v475_v35 }
  0xdd   :  { %2215 = vmatprep.mubr.msk.f32.mxu1 %vm2507_vm0, %v4215_v16  ;;  %2131 = vmatprep.mubr.msk.f32.mxu0 %vm2507_vm0, %v4215_v16 }
  0xde   :  { %2297 = vmatprep.subr.mxu0 %v4215_v16 }
  0xdf   :  { %2298 = vmatpush3.msra.mxu0 %v1727_v61 }
  0xe0   :  { %2216 = vmatmul.mubr.msk.f32.gmra.mxu1 %vm491_vm1, %v800_v24  ;;  %2132 = vmatmul.mubr.msk.f32.gmra.mxu0 %vm491_vm1, %v476_v43 }
  0xe1   :  { %2218 = vmatprep.mubr.msk.f32.mxu1 %vm2507_vm0, %v4215_v16  ;;  %2134 = vmatprep.mubr.msk.f32.mxu0 %vm2507_vm0, %v4215_v16 }
  0xe2   :  { %2299 = vmatprep.subr.mxu0 %v4215_v16 }
  0xe3   :  { %2300 = vmatpush3.msra.mxu0 %v1726_v20 }
  0xe4   :  { %2219 = vmatmul.mubr.msk.f32.gmra.mxu1 %vm491_vm1, %v801_v34  ;;  %2135 = vmatmul.mubr.msk.f32.gmra.mxu0 %vm491_vm1, %v477_v18 }
  0xe5   :  { %2221 = vmatprep.mubr.msk.f32.mxu1 %vm2507_vm0, %v4215_v16  ;;  %2137 = vmatprep.mubr.msk.f32.mxu0 %vm2507_vm0, %v4215_v16 }
  0xe8   :  { %2222 = vmatmul.mubr.msk.f32.gmra.mxu1 %vm491_vm1, %v802_v39  ;;  %2138 = vmatmul.mubr.msk.f32.gmra.mxu0 %vm491_vm1, %v478_v32 }
  0xe9   :  { %2224 = vmatprep.mubr.msk.f32.mxu1 %vm2507_vm0, %v4215_v16  ;;  %2140 = vmatprep.mubr.msk.f32.mxu0 %vm2507_vm0, %v4215_v16 }
  0xec   :  { %2225 = vmatmul.mubr.msk.f32.gmra.mxu1 %vm491_vm1, %v803_v52  ;;  %2141 = vmatmul.mubr.msk.f32.gmra.mxu0 %vm491_vm1, %v479_v40 }
  0xed   :  { %2227 = vmatprep.mubr.msk.f32.mxu1 %vm2507_vm0, %v4215_v16  ;;  %2143 = vmatprep.mubr.msk.f32.mxu0 %vm2507_vm0, %v4215_v16 }
  0xf0   :  { %2228 = vmatmul.mubr.msk.f32.gmra.mxu1 %vm491_vm1, %v804_v37  ;;  %2144 = vmatmul.mubr.msk.f32.gmra.mxu0 %vm491_vm1, %v480_v1  ;;  %v1422_v37 = vld [vmem:[#allocation7] sm:$0xff]  ;;  %v1569_v1 = vld [vmem:[#allocation7 + $0xe8] sm:$0xff] }
  0xf1   :  { %2230 = vmatprep.mubr.msk.f32.mxu1 %vm2507_vm0, %v4215_v16  ;;  %2146 = vmatprep.mubr.msk.f32.mxu0 %vm2507_vm0, %v4215_v16 }
  0xf4   :  { %2231 = vmatmul.mubr.msk.f32.gmra.mxu1 %vm491_vm1, %v805_v53  ;;  %2147 = vmatmul.mubr.msk.f32.gmra.mxu0 %vm491_vm1, %v481_v11  ;;  %v1364_v11 = vld [vmem:[%s4240_s10] sm:$0xff] }
  0xf5   :  { %2233 = vmatprep.mubr.msk.f32.mxu1 %vm2507_vm0, %v4215_v16  ;;  %2149 = vmatprep.mubr.msk.f32.mxu0 %vm2507_vm0, %v4215_v16 }
  0xf8   :  { %2234 = vmatmul.mubr.msk.f32.gmra.mxu1 %vm491_vm1, %v806_v49  ;;  %2150 = vmatmul.mubr.msk.f32.gmra.mxu0 %vm491_vm1, %v482_v41  ;;  %v1973_v49 = vld [vmem:[%s4240_s10 + $0xe8] sm:$0xff] }
  0xf9   :  { %2236 = vmatprep.mubr.msk.f32.mxu1 %vm2507_vm0, %v4215_v16  ;;  %2152 = vmatprep.mubr.msk.f32.mxu0 %vm2507_vm0, %v4215_v16 }
  0xfc   :  { %2237 = vmatmul.mubr.msk.f32.gmra.mxu1 %vm491_vm1, %v807_v54  ;;  %2153 = vmatmul.mubr.msk.f32.gmra.mxu0 %vm491_vm1, %v483_v63 }
  0xfd   :  { %2239 = vmatprep.mubr.msk.f32.mxu1 %vm2507_vm0, %v4215_v16  ;;  %2155 = vmatprep.mubr.msk.f32.mxu0 %vm2507_vm0, %v4215_v16 }
 0x100   :  { %2240 = vmatmul.mubr.msk.f32.gmra.mxu1 %vm491_vm1, %v808_v9  ;;  %2156 = vmatmul.mubr.msk.f32.gmra.mxu0 %vm491_vm1, %v484_v42 }
 0x101   :  { %2242 = vmatprep.mubr.msk.f32.mxu1 %vm2507_vm0, %v4215_v16  ;;  %2158 = vmatprep.mubr.msk.f32.mxu0 %vm2507_vm0, %v4215_v16 }
 0x104   :  { %2243 = vmatmul.mubr.msk.f32.gmra.mxu1 %vm491_vm1, %v809_v47  ;;  %2159 = vmatmul.mubr.msk.f32.gmra.mxu0 %vm491_vm1, %v485_v25 }
 0x105   :  { %2245 = vmatprep.mubr.msk.f32.mxu1 %vm2507_vm0, %v4215_v16  ;;  %2161 = vmatprep.mubr.msk.f32.mxu0 %vm2507_vm0, %v4215_v16 }
 0x108   :  { %2246 = vmatmul.mubr.msk.f32.gmra.mxu1 %vm491_vm1, %v810_v45  ;;  %2162 = vmatmul.mubr.msk.f32.gmra.mxu0 %vm491_vm1, %v486_v38 }
 0x109   :  { %2248 = vmatprep.mubr.msk.f32.mxu1 %vm2507_vm0, %v4215_v16  ;;  %2164 = vmatprep.mubr.msk.f32.mxu0 %vm2507_vm0, %v4215_v16 }
 0x10c   :  { %2249 = vmatmul.mubr.msk.f32.gmra.mxu1 %vm491_vm1, %v811_v2  ;;  %2165 = vmatmul.mubr.msk.f32.gmra.mxu0 %vm491_vm1, %v487_v50 }
 0x10d   :  { %2251 = vmatprep.mubr.msk.f32.mxu1 %vm2507_vm0, %v4215_v16  ;;  %2167 = vmatprep.mubr.msk.f32.mxu0 %vm2507_vm0, %v4215_v16 }
 0x110   :  { %2252 = vmatmul.mubr.msk.f32.gmra.mxu1 %vm491_vm1, %v812_v6  ;;  %2168 = vmatmul.mubr.msk.f32.gmra.mxu0 %vm491_vm1, %v488_v58 }
 0x111   :  { %2254 = vmatprep.mubr.msk.f32.mxu1 %vm2507_vm0, %v4215_v16  ;;  %2170 = vmatprep.mubr.msk.f32.mxu0 %vm2507_vm0, %v4215_v16 }
 0x114   :  { %2255 = vmatmul.mubr.msk.f32.gmra.mxu1 %vm491_vm1, %v813_v12  ;;  %2171 = vmatmul.mubr.msk.f32.gmra.mxu0 %vm491_vm1, %v489_v15 }
 0x115   :  { %2257 = vmatprep.mubr.msk.f32.mxu1 %vm2507_vm0, %v4215_v16  ;;  %2173 = vmatprep.mubr.msk.f32.mxu0 %vm2507_vm0, %v4215_v16 }
 0x118   :  { %2258 = vmatmul.mubr.msk.f32.gmra.mxu1 %vm491_vm1, %v814_v4  ;;  %2174 = vmatmul.mubr.msk.f32.gmra.mxu0 %vm491_vm1, %v490_v0  ;;  %v1365_v0 = vld [vmem:[%s4240_s10 + $0x8] sm:$0xff] }
 0x119   :  { %2260 = vmatprep.mubr.msk.f32.mxu1 %vm2507_vm0, %v4215_v16  ;;  %2301 = vmatprep.mubr.msk.f32.mxu0 %vm2507_vm0, %v4215_v16 }
 0x11c   :  { %2261 = vmatmul.mubr.msk.f32.gmra.mxu1 %vm491_vm1, %v815_v5  ;;  %v1974_v5 = vld [vmem:[%s4240_s10 + $0xf0] sm:$0xff] }
 0x11d   :  { %2263 = vmatprep.mubr.msk.f32.mxu1 %vm2507_vm0, %v4215_v16 }
 0x120   :  { %2264 = vmatmul.mubr.msk.f32.gmra.mxu1 %vm491_vm1, %v816_v8 }
 0x121   :  { %2266 = vmatprep.mubr.msk.f32.mxu1 %vm2507_vm0, %v4215_v16 }
 0x124   :  { %2267 = vmatmul.mubr.msk.f32.gmra.mxu1 %vm491_vm1, %v817_v22 }
 0x168   :  { %v645_v7 = vpop.f32.mrf.mxu0 }
 0x16a   :  { %v2091_v44 = vpop.f32.mrf.mxu0 }
 0x16c   :  { %v3490_v21 = vpop.f32.mrf.mxu0 }
 0x16e   :  { %v2094_v46 = vpop.f32.mrf.mxu0 }
 0x16f   :  { %v1424_v46 = vld [vmem:[#allocation7 + $0x10] sm:$0xff] }
 0x170   :  { %v3496_v23 = vpop.f32.mrf.mxu0 }
 0x172   :  { %v2097_v28 = vpop.f32.mrf.mxu0 }
 0x174   :  { %v971_v31 = vpop.f32.mrf.mxu1  ;;  %v3512_v27 = vpop.f32.mrf.mxu0 }
 0x175   :  { %v1116_v35 = vadd.f32 %v971_v31, %v645_v7  ;;  %v1146_v24 = vmul.f32 %v971_v31, %v645_v7  ;;  %v1208_v43 = vmax.f32 %v645_v7, %v971_v31  ;;  %v1270_v40 = vmin.f32 %v645_v7, %v971_v31 }
 0x176   :  { %v2184_v39 = vpop.f32.mrf.mxu1  ;;  %v2100_v32 = vpop.f32.mrf.mxu0  ;;  %v1451_v45 = vmul.f32 %v1422_v37, %v971_v31  ;;  %v1598_v38 = vmul.f32 %v1569_v1, %v971_v31  ;;  %v1366_v31 = vld [vmem:[%s4240_s10 + $0x10] sm:$0xff] }
 0x177   :  { %v1178_v52 = vsel %vm3508_vm2, %v1146_v24, %v1116_v35 }
 0x178   :  { %v1240_v53 = vsel %vm3515_vm3, %v1208_v43, %v1178_v52  ;;  %v976_v41 = vpop.f32.mrf.mxu1  ;;  %v3537_v54 = vpop.f32.mrf.mxu0 }
 0x179   :  { %v1302_v63 = vsel %vm3519_vm4, %v1270_v40, %v1240_v53  ;;  %v1117_v9 = vadd.f32 %v976_v41, %v3490_v21  ;;  %v1147_v42 = vmul.f32 %v976_v41, %v3490_v21  ;;  %v1209_v47 = vmax.f32 %v3490_v21, %v976_v41 }
 0x17a   :  { %v1335_v25 = vsel %vm3525_vm5, %v645_v7, %v1302_v63  ;;  %v2187_v2 = vpop.f32.mrf.mxu1  ;;  %v2103_v50 = vpop.f32.mrf.mxu0  ;;  %v1271_v15 = vmin.f32 %v3490_v21, %v976_v41  ;;  %v1452_v7 = vmul.f32 %v1423_v57, %v976_v41  ;;  %v1599_v10 = vmul.f32 %v1570_v48, %v976_v41 }
 0x17b   :  { %v1393_v6 = vmul.f32 %v1364_v11, %v1335_v25  ;;  %v1539_v58 = vmul.f32 %v1973_v49, %v1335_v25  ;;  %v1179_v12 = vsel %vm3508_vm2, %v1147_v42, %v1117_v9  ;;  %v1425_v49 = vld [vmem:[#allocation7 + $0x18] sm:$0xff]  ;;  %v1976_v2 = vld [vmem:[%s4240_s10 + $0x100] sm:$0xff] }
 0x17c   :  { %v1241_v4 = vsel %vm3515_vm3, %v1209_v47, %v1179_v12  ;;  %v981_v8 = vpop.f32.mrf.mxu1  ;;  %v3557_v22 = vpop.f32.mrf.mxu0  ;;  %v1572_v47 = vld [vmem:[#allocation7 + $0x100] sm:$0xff] }
 0x17d   :  { %v1480_v26 = vadd.f32 %v1451_v45, %v1393_v6  ;;  %v1627_v17 = vadd.f32 %v1598_v38, %v1539_v58  ;;  %v1303_v30 = vsel %vm3519_vm4, %v1271_v15, %v1241_v4  ;;  %v1118_v60 = vadd.f32 %v981_v8, %v3496_v23 }
 0x17e   :  { %v1336_v33 = vsel %vm3525_vm5, %v3490_v21, %v1303_v30  ;;  %v1148_v62 = vmul.f32 %v981_v8, %v3496_v23  ;;  %v1210_v59 = vmax.f32 %v3496_v23, %v981_v8  ;;  %v2190_v55 = vpop.f32.mrf.mxu1  ;;  %v2106_v19 = vpop.f32.mrf.mxu0  ;;  %v1272_v61 = vmin.f32 %v3496_v23, %v981_v8  ;;  %v1426_v30 = vld [vmem:[#allocation7 + $0x20] sm:$0xff] }
 0x17f   :  { %v1394_v3 = vmul.f32 %v1365_v0, %v1336_v33  ;;  %v1540_v44 = vmul.f32 %v1974_v5, %v1336_v33  ;;  %v1453_v43 = vmul.f32 %v1424_v46, %v981_v8  ;;  %v1600_v11 = vmul.f32 %v1571_v13, %v981_v8  ;;  %v1573_v55 = vld [vmem:[#allocation7 + $0x108] sm:$0xff] }
 0x180   :  { %v1180_v51 = vsel %vm3508_vm2, %v1148_v62, %v1118_v60  ;;  %v986_v36 = vpop.f32.mrf.mxu1  ;;  %v3570_v28 = vpop.f32.mrf.mxu0 }
 0x181   :  { %v1481_v21 = vadd.f32 %v1452_v7, %v1394_v3  ;;  %v1628_v20 = vadd.f32 %v1599_v10, %v1540_v44  ;;  %v1242_v29 = vsel %vm3515_vm3, %v1210_v59, %v1180_v51  ;;  %v1119_v35 = vadd.f32 %v986_v36, %v3512_v27  ;;  %v1977_v44 = vld [vmem:[%s4240_s10 + $0x108] sm:$0xff] }
 0x182   :  { %v1304_v24 = vsel %vm3519_vm4, %v1272_v61, %v1242_v29  ;;  %v1149_v39 = vmul.f32 %v986_v36, %v3512_v27  ;;  %v1211_v32 = vmax.f32 %v3512_v27, %v986_v36  ;;  %v2193_v52 = vpop.f32.mrf.mxu1  ;;  %v2109_v40 = vpop.f32.mrf.mxu0  ;;  %v1273_v42 = vmin.f32 %v3512_v27, %v986_v36 }
 0x183   :  { %v1656_v37 = vadd.f32 %v1481_v21, %v1480_v26  ;;  %v1690_v1 = vadd.f32 %v1628_v20, %v1627_v17  ;;  %v1337_v53 = vsel %vm3525_vm5, %v3496_v23, %v1304_v24  ;;  %v1367_v23 = vld [vmem:[%s4240_s10 + $0x18] sm:$0xff]  ;;  %v1454_v4 = vmul.f32 %v1425_v49, %v986_v36  ;;  %v1978_v49 = vld [vmem:[%s4240_s10 + $0x110] sm:$0xff] }
 0x184   :  { %v1395_v41 = vmul.f32 %v1366_v31, %v1337_v53  ;;  %v1541_v63 = vmul.f32 %v1975_v14, %v1337_v53  ;;  %v1181_v9 = vsel %vm3508_vm2, %v1149_v39, %v1119_v35  ;;  %v991_v25 = vpop.f32.mrf.mxu1  ;;  %v3591_v45 = vpop.f32.mrf.mxu0  ;;  %v1601_v8 = vmul.f32 %v1572_v47, %v986_v36 }
 0x185   :  { %v1243_v38 = vsel %vm3515_vm3, %v1211_v32, %v1181_v9  ;;  %v1120_v50 = vadd.f32 %v991_v25, %v3537_v54  ;;  %v1150_v6 = vmul.f32 %v991_v25, %v3537_v54  ;;  %v1212_v58 = vmax.f32 %v3537_v54, %v991_v25 }
 0x186   :  { %v1482_v12 = vadd.f32 %v1453_v43, %v1395_v41  ;;  %v1629_v15 = vadd.f32 %v1600_v11, %v1541_v63  ;;  %v1305_v57 = vsel %vm3519_vm4, %v1273_v42, %v1243_v38  ;;  %v2196_v0 = vpop.f32.mrf.mxu1  ;;  %v2112_v5 = vpop.f32.mrf.mxu0  ;;  %v1274_v17 = vmin.f32 %v3537_v54, %v991_v25  ;;  %v1427_v43 = vld [vmem:[#allocation7 + $0x28] sm:$0xff] }
 0x187   :  { %v1338_v48 = vsel %vm3525_vm5, %v3512_v27, %v1305_v57  ;;  %v1182_v26 = vsel %vm3508_vm2, %v1150_v6, %v1120_v50  ;;  %v1368_v27 = vld [vmem:[%s4240_s10 + $0x20] sm:$0xff]  ;;  %v1455_v21 = vmul.f32 %v1426_v30, %v991_v25  ;;  %v1602_v14 = vmul.f32 %v1573_v55, %v991_v25  ;;  %v1428_v5 = vld [vmem:[#allocation7 + $0x30] sm:$0xff] }
 0x188   :  { %v1657_v60 = vadd.f32 %v1656_v37, %v1482_v12  ;;  %v1691_v33 = vadd.f32 %v1690_v1, %v1629_v15  ;;  %v1396_v62 = vmul.f32 %v1367_v23, %v1338_v48  ;;  %v1542_v59 = vmul.f32 %v1976_v2, %v1338_v48  ;;  %v996_v19 = vpop.f32.mrf.mxu1  ;;  %v3612_v3 = vpop.f32.mrf.mxu0  ;;  %v1574_v37 = vld [vmem:[#allocation7 + $0x110] sm:$0xff] }
 0x189   :  { %v1244_v7 = vsel %vm3515_vm3, %v1212_v58, %v1182_v26  ;;  %v1121_v10 = vadd.f32 %v996_v19, %v3557_v22  ;;  %v1151_v46 = vmul.f32 %v996_v19, %v3557_v22  ;;  %v1213_v51 = vmax.f32 %v3557_v22, %v996_v19 }
 0x18a   :  { %v1483_v61 = vadd.f32 %v1454_v4, %v1396_v62  ;;  %v1630_v13 = vadd.f32 %v1601_v8, %v1542_v59  ;;  %v1306_v36 = vsel %vm3519_vm4, %v1274_v17, %v1244_v7  ;;  %v2199_v20 = vpop.f32.mrf.mxu1  ;;  %v2115_v29 = vpop.f32.mrf.mxu0  ;;  %v1275_v24 = vmin.f32 %v3557_v22, %v996_v19 }
 0x18b   :  { %v1339_v31 = vsel %vm3525_vm5, %v3537_v54, %v1306_v36  ;;  %v1183_v35 = vsel %vm3508_vm2, %v1151_v46, %v1121_v10  ;;  %v1369_v54 = vld [vmem:[%s4240_s10 + $0x28] sm:$0xff]  ;;  %v1456_v38 = vmul.f32 %v1427_v43, %v996_v19  ;;  %v1603_v6 = vmul.f32 %v1574_v37, %v996_v19  ;;  %v1371_v29 = vld [vmem:[%s4240_s10 + $0x38] sm:$0xff] }
 0x18c   :  { %v1658_v39 = vadd.f32 %v1657_v60, %v1483_v61  ;;  %v1692_v32 = vadd.f32 %v1691_v33, %v1630_v13  ;;  %v1397_v52 = vmul.f32 %v1368_v27, %v1339_v31  ;;  %v1543_v40 = vmul.f32 %v1977_v44, %v1339_v31  ;;  %v1001_v1 = vpop.f32.mrf.mxu1  ;;  %v3633_v53 = vpop.f32.mrf.mxu0  ;;  %v1979_v44 = vld [vmem:[%s4240_s10 + $0x118] sm:$0xff] }
 0x18d   :  { %v1245_v11 = vsel %vm3515_vm3, %v1213_v51, %v1183_v35  ;;  %v1122_v41 = vadd.f32 %v1001_v1, %v3570_v28  ;;  %v1152_v63 = vmul.f32 %v1001_v1, %v3570_v28  ;;  %v1214_v9 = vmax.f32 %v3570_v28, %v1001_v1  ;;  %v1575_v13 = vld [vmem:[#allocation7 + $0x118] sm:$0xff] }
 0x18e   :  { %v1484_v42 = vadd.f32 %v1455_v21, %v1397_v52  ;;  %v1631_v47 = vadd.f32 %v1602_v14, %v1543_v40  ;;  %v1307_v25 = vsel %vm3519_vm4, %v1275_v24, %v1245_v11  ;;  %v2202_v23 = vpop.f32.mrf.mxu1  ;;  %v2118_v2 = vpop.f32.mrf.mxu0  ;;  %v1276_v12 = vmin.f32 %v3570_v28, %v1001_v1  ;;  %v1429_v31 = vld [vmem:[#allocation7 + $0x38] sm:$0xff]  ;;  %v1576_v14 = vld [vmem:[#allocation7 + $0x120] sm:$0xff] }
 0x18f   :  { %v1340_v50 = vsel %vm3525_vm5, %v3557_v22, %v1307_v25  ;;  %v1184_v58 = vsel %vm3508_vm2, %v1152_v63, %v1122_v41  ;;  %v1370_v22 = vld [vmem:[%s4240_s10 + $0x30] sm:$0xff]  ;;  %v1457_v27 = vmul.f32 %v1428_v5, %v1001_v1  ;;  %v1604_v11 = vmul.f32 %v1575_v13, %v1001_v1  ;;  %v1430_v63 = vld [vmem:[#allocation7 + $0x40] sm:$0xff] }
 0x190   :  { %v1659_v15 = vadd.f32 %v1658_v39, %v1484_v42  ;;  %v1693_v57 = vadd.f32 %v1692_v32, %v1631_v47  ;;  %v1398_v4 = vmul.f32 %v1369_v54, %v1340_v50  ;;  %v1544_v0 = vmul.f32 %v1978_v49, %v1340_v50  ;;  %v1006_v48 = vpop.f32.mrf.mxu1  ;;  %v3654_v8 = vpop.f32.mrf.mxu0  ;;  %v1980_v49 = vld [vmem:[%s4240_s10 + $0x120] sm:$0xff]  ;;  %v1981_v50 = vld [vmem:[%s4240_s10 + $0x128] sm:$0xff] }
 0x191   :  { %v1246_v26 = vsel %vm3515_vm3, %v1214_v9, %v1184_v58  ;;  %v1123_v17 = vadd.f32 %v1006_v48, %v3591_v45  ;;  %v1153_v30 = vmul.f32 %v1006_v48, %v3591_v45  ;;  %v1215_v60 = vmax.f32 %v3591_v45, %v1006_v48  ;;  %v1372_v2 = vld [vmem:[%s4240_s10 + $0x40] sm:$0xff] }
 0x192   :  { %v1485_v33 = vadd.f32 %v1456_v38, %v1398_v4  ;;  %v1632_v62 = vadd.f32 %v1603_v6, %v1544_v0  ;;  %v1308_v59 = vsel %vm3519_vm4, %v1276_v12, %v1246_v26  ;;  %v2205_v55 = vpop.f32.mrf.mxu1  ;;  %v2121_v19 = vpop.f32.mrf.mxu0  ;;  %v1277_v36 = vmin.f32 %v3591_v45, %v1006_v48  ;;  %v1577_v38 = vld [vmem:[#allocation7 + $0x128] sm:$0xff] }
 0x193   :  { %v1341_v7 = vsel %vm3525_vm5, %v3570_v28, %v1308_v59  ;;  %v1185_v10 = vsel %vm3508_vm2, %v1153_v30, %v1123_v17  ;;  %v1458_v42 = vmul.f32 %v1429_v31, %v1006_v48  ;;  %v1605_v47 = vmul.f32 %v1576_v14, %v1006_v48  ;;  %v1578_v19 = vld [vmem:[#allocation7 + $0x130] sm:$0xff] }
 0x194   :  { %v1660_v46 = vadd.f32 %v1659_v15, %v1485_v33  ;;  %v1694_v51 = vadd.f32 %v1693_v57, %v1632_v62  ;;  %v1399_v61 = vmul.f32 %v1370_v22, %v1341_v7  ;;  %v1011_v21 = vpop.f32.mrf.mxu1  ;;  %v3675_v20 = vpop.f32.mrf.mxu0  ;;  %v1247_v28 = vsel %vm3515_vm3, %v1215_v60, %v1185_v10  ;;  %v1431_v60 = vld [vmem:[#allocation7 + $0x48] sm:$0xff] }
 0x195   :  { %v1124_v35 = vadd.f32 %v1011_v21, %v3612_v3  ;;  %v1154_v24 = vmul.f32 %v1011_v21, %v3612_v3  ;;  %v1216_v43 = vmax.f32 %v3612_v3, %v1011_v21  ;;  %v1545_v39 = vmul.f32 %v1979_v44, %v1341_v7 }
 0x196   :  { %v1309_v32 = vsel %vm3519_vm4, %v1277_v36, %v1247_v28  ;;  %v2208_v52 = vpop.f32.mrf.mxu1  ;;  %v2124_v40 = vpop.f32.mrf.mxu0  ;;  %v1486_v37 = vadd.f32 %v1457_v27, %v1399_v61  ;;  %v1278_v25 = vmin.f32 %v3612_v3, %v1011_v21  ;;  %v1459_v0 = vmul.f32 %v1430_v63, %v1011_v21 }
 0x197   :  { %v1342_v54 = vsel %vm3525_vm5, %v3591_v45, %v1309_v32  ;;  %v1186_v41 = vsel %vm3508_vm2, %v1154_v24, %v1124_v35  ;;  %v1633_v15 = vadd.f32 %v1604_v11, %v1545_v39  ;;  %v1606_v17 = vmul.f32 %v1577_v38, %v1011_v21  ;;  %v1982_v24 = vld [vmem:[%s4240_s10 + $0x130] sm:$0xff]  ;;  %v1579_v11 = vld [vmem:[#allocation7 + $0x138] sm:$0xff] }
 0x198   :  { %v1400_v9 = vmul.f32 %v1371_v29, %v1342_v54  ;;  %v1016_v23 = vpop.f32.mrf.mxu1  ;;  %v3696_v1 = vpop.f32.mrf.mxu0  ;;  %v1248_v45 = vsel %vm3515_vm3, %v1216_v43, %v1186_v41  ;;  %v1546_v57 = vmul.f32 %v1980_v49, %v1342_v54  ;;  %v1661_v26 = vadd.f32 %v1660_v46, %v1486_v37  ;;  %v1432_v39 = vld [vmem:[#allocation7 + $0x50] sm:$0xff] }
 0x199   :  { %v1125_v6 = vadd.f32 %v1016_v23, %v3633_v53  ;;  %v1155_v58 = vmul.f32 %v1016_v23, %v3633_v53  ;;  %v1217_v12 = vmax.f32 %v3633_v53, %v1016_v23  ;;  %v1310_v4 = vsel %vm3519_vm4, %v1278_v25, %v1248_v45  ;;  %v1374_v41 = vld [vmem:[%s4240_s10 + $0x50] sm:$0xff] }
 0x19a   :  { %v2211_v5 = vpop.f32.mrf.mxu1  ;;  %v2127_v48 = vpop.f32.mrf.mxu0  ;;  %v1343_v22 = vsel %vm3525_vm5, %v3612_v3, %v1310_v4  ;;  %v1487_v33 = vadd.f32 %v1458_v42, %v1400_v9  ;;  %v1279_v55 = vmin.f32 %v3633_v53, %v1016_v23  ;;  %v1373_v3 = vld [vmem:[%s4240_s10 + $0x48] sm:$0xff]  ;;  %v1695_v13 = vadd.f32 %v1694_v51, %v1633_v15 }
 0x19b   :  { %v1187_v30 = vsel %vm3508_vm2, %v1155_v58, %v1125_v6  ;;  %v1401_v62 = vmul.f32 %v1372_v2, %v1343_v22  ;;  %v1547_v59 = vmul.f32 %v1981_v50, %v1343_v22  ;;  %v1634_v36 = vadd.f32 %v1605_v47, %v1546_v57  ;;  %v1983_v58 = vld [vmem:[%s4240_s10 + $0x138] sm:$0xff] }
 0x19c   :  { %v1021_v7 = vpop.f32.mrf.mxu1  ;;  %v3717_v27 = vpop.f32.mrf.mxu0  ;;  %v1249_v44 = vsel %vm3515_vm3, %v1217_v12, %v1187_v30  ;;  %v1460_v28 = vmul.f32 %v1431_v60, %v1016_v23  ;;  %v1607_v43 = vmul.f32 %v1578_v19, %v1016_v23  ;;  %v1662_v32 = vadd.f32 %v1661_v26, %v1487_v33  ;;  %v1433_v57 = vld [vmem:[#allocation7 + $0x58] sm:$0xff]  ;;  %v1580_v26 = vld [vmem:[#allocation7 + $0x140] sm:$0xff] }
 0x19d   :  { %v1126_v10 = vadd.f32 %v1021_v7, %v3654_v8  ;;  %v1156_v46 = vmul.f32 %v1021_v7, %v3654_v8  ;;  %v1218_v61 = vmax.f32 %v3654_v8, %v1021_v7  ;;  %v1311_v21 = vsel %vm3519_vm4, %v1279_v55, %v1249_v44  ;;  %v1375_v30 = vld [vmem:[%s4240_s10 + $0x58] sm:$0xff]  ;;  %v1984_v60 = vld [vmem:[%s4240_s10 + $0x140] sm:$0xff] }
 0x19e   :  { %v2214_v29 = vpop.f32.mrf.mxu1  ;;  %v2130_v31 = vpop.f32.mrf.mxu0  ;;  %v1488_v14 = vadd.f32 %v1459_v0, %v1401_v62  ;;  %v1344_v35 = vsel %vm3525_vm5, %v3633_v53, %v1311_v21  ;;  %v1635_v52 = vadd.f32 %v1606_v17, %v1547_v59  ;;  %v1280_v37 = vmin.f32 %v3654_v8, %v1021_v7  ;;  %v1434_v21 = vld [vmem:[#allocation7 + $0x60] sm:$0xff] }
 0x19f   :  { %v1188_v51 = vsel %vm3508_vm2, %v1156_v46, %v1126_v10  ;;  %v1402_v40 = vmul.f32 %v1373_v3, %v1344_v35  ;;  %v1696_v47 = vadd.f32 %v1695_v13, %v1634_v36  ;;  %v1548_v25 = vmul.f32 %v1982_v24, %v1344_v35  ;;  %v1581_v35 = vld [vmem:[#allocation7 + $0x148] sm:$0xff] }
 0x1a0   :  { %v1026_v54 = vpop.f32.mrf.mxu1  ;;  %v3738_v49 = vpop.f32.mrf.mxu0  ;;  %v1250_v53 = vsel %vm3515_vm3, %v1218_v61, %v1188_v51  ;;  %v1461_v23 = vmul.f32 %v1432_v39, %v1021_v7  ;;  %v1663_v50 = vadd.f32 %v1662_v32, %v1488_v14  ;;  %v1608_v12 = vmul.f32 %v1579_v11, %v1021_v7 }
 0x1a1   :  { %v1127_v63 = vadd.f32 %v1026_v54, %v3675_v20  ;;  %v1157_v9 = vmul.f32 %v1026_v54, %v3675_v20  ;;  %v1219_v42 = vmax.f32 %v3675_v20, %v1026_v54  ;;  %v1312_v38 = vsel %vm3519_vm4, %v1280_v37, %v1250_v53 }
 0x1a2   :  { %v2217_v45 = vpop.f32.mrf.mxu1  ;;  %v2133_v2 = vpop.f32.mrf.mxu0  ;;  %v1345_v6 = vsel %vm3525_vm5, %v3654_v8, %v1312_v38  ;;  %v1697_v4 = vadd.f32 %v1696_v47, %v1635_v52  ;;  %v1489_v0 = vadd.f32 %v1460_v28, %v1402_v40  ;;  %v1281_v48 = vmin.f32 %v3675_v20, %v1026_v54  ;;  %v1435_v38 = vld [vmem:[#allocation7 + $0x68] sm:$0xff] }
 0x1a3   :  { %v1189_v15 = vsel %vm3508_vm2, %v1157_v9, %v1127_v63  ;;  %v1403_v5 = vmul.f32 %v1374_v41, %v1345_v6  ;;  %v1636_v55 = vadd.f32 %v1607_v43, %v1548_v25  ;;  %v1549_v19 = vmul.f32 %v1983_v58, %v1345_v6  ;;  %v1582_v6 = vld [vmem:[#allocation7 + $0x150] sm:$0xff] }
 0x1a4   :  { %v1031_v22 = vpop.f32.mrf.mxu1  ;;  %v3759_v17 = vpop.f32.mrf.mxu0  ;;  %v1251_v8 = vsel %vm3515_vm3, %v1219_v42, %v1189_v15  ;;  %v1462_v44 = vmul.f32 %v1433_v57, %v1026_v54  ;;  %v1609_v13 = vmul.f32 %v1580_v26, %v1026_v54  ;;  %v1664_v28 = vadd.f32 %v1663_v50, %v1489_v0  ;;  %v1985_v42 = vld [vmem:[%s4240_s10 + $0x148] sm:$0xff] }
 0x1a5   :  { %v1128_v33 = vadd.f32 %v1031_v22, %v3696_v1  ;;  %v1158_v62 = vmul.f32 %v1031_v22, %v3696_v1  ;;  %v1220_v59 = vmax.f32 %v3696_v1, %v1031_v22  ;;  %v1313_v7 = vsel %vm3519_vm4, %v1281_v48, %v1251_v8  ;;  %v1377_v15 = vld [vmem:[%s4240_s10 + $0x68] sm:$0xff] }
 0x1a6   :  { %v2220_v3 = vpop.f32.mrf.mxu1  ;;  %v2136_v10 = vpop.f32.mrf.mxu0  ;;  %v1490_v46 = vadd.f32 %v1461_v23, %v1403_v5  ;;  %v1346_v61 = vsel %vm3525_vm5, %v3675_v20, %v1313_v7  ;;  %v1282_v14 = vmin.f32 %v3696_v1, %v1031_v22  ;;  %v1376_v20 = vld [vmem:[%s4240_s10 + $0x60] sm:$0xff]  ;;  %v1698_v40 = vadd.f32 %v1697_v4, %v1636_v55 }
 0x1a7   :  { %v1190_v36 = vsel %vm3508_vm2, %v1158_v62, %v1128_v33  ;;  %v1404_v29 = vmul.f32 %v1375_v30, %v1346_v61  ;;  %v1550_v31 = vmul.f32 %v1984_v60, %v1346_v61  ;;  %v1637_v37 = vadd.f32 %v1608_v12, %v1549_v19  ;;  %v1986_v62 = vld [vmem:[%s4240_s10 + $0x150] sm:$0xff] }
 0x1a8   :  { %v1036_v24 = vpop.f32.mrf.mxu1  ;;  %v3780_v43 = vpop.f32.mrf.mxu0  ;;  %v1252_v51 = vsel %vm3515_vm3, %v1220_v59, %v1190_v36  ;;  %v1463_v54 = vmul.f32 %v1434_v21, %v1031_v22  ;;  %v1665_v63 = vadd.f32 %v1664_v28, %v1490_v46  ;;  %v1610_v47 = vmul.f32 %v1581_v35, %v1031_v22  ;;  %v1436_v19 = vld [vmem:[#allocation7 + $0x70] sm:$0xff]  ;;  %v1583_v46 = vld [vmem:[#allocation7 + $0x158] sm:$0xff] }
 0x1a9   :  { %v1129_v39 = vadd.f32 %v1036_v24, %v3717_v27  ;;  %v1159_v32 = vmul.f32 %v1036_v24, %v3717_v27  ;;  %v1221_v52 = vmax.f32 %v3717_v27, %v1036_v24  ;;  %v1314_v11 = vsel %vm3519_vm4, %v1282_v14, %v1252_v51  ;;  %v1378_v36 = vld [vmem:[%s4240_s10 + $0x70] sm:$0xff]  ;;  %v1987_v21 = vld [vmem:[%s4240_s10 + $0x158] sm:$0xff] }
 0x1aa   :  { %v2223_v53 = vpop.f32.mrf.mxu1  ;;  %v2139_v41 = vpop.f32.mrf.mxu0  ;;  %v1347_v9 = vsel %vm3525_vm5, %v3696_v1, %v1314_v11  ;;  %v1491_v23 = vadd.f32 %v1462_v44, %v1404_v29  ;;  %v1638_v45 = vadd.f32 %v1609_v13, %v1550_v31  ;;  %v1283_v50 = vmin.f32 %v3717_v27, %v1036_v24  ;;  %v1437_v11 = vld [vmem:[#allocation7 + $0x78] sm:$0xff] }
 0x1ab   :  { %v1191_v25 = vsel %vm3508_vm2, %v1159_v32, %v1129_v39  ;;  %v1405_v2 = vmul.f32 %v1376_v20, %v1347_v9  ;;  %v1699_v5 = vadd.f32 %v1698_v40, %v1637_v37  ;;  %v1551_v48 = vmul.f32 %v1985_v42, %v1347_v9  ;;  %v1584_v9 = vld [vmem:[#allocation7 + $0x160] sm:$0xff] }
 0x1ac   :  { %v1041_v58 = vpop.f32.mrf.mxu1  ;;  %v3801_v12 = vpop.f32.mrf.mxu0  ;;  %v1253_v1 = vsel %vm3515_vm3, %v1221_v52, %v1191_v25  ;;  %v1464_v22 = vmul.f32 %v1435_v38, %v1036_v24  ;;  %v1611_v59 = vmul.f32 %v1582_v6, %v1036_v24  ;;  %v1666_v7 = vadd.f32 %v1665_v63, %v1491_v23 }
 0x1ad   :  { %v1130_v57 = vadd.f32 %v1041_v58, %v3738_v49  ;;  %v1160_v4 = vmul.f32 %v1041_v58, %v3738_v49  ;;  %v1222_v0 = vmax.f32 %v3738_v49, %v1041_v58  ;;  %v1315_v26 = vsel %vm3519_vm4, %v1283_v50, %v1253_v1 }
 0x1ae   :  { %v2226_v8 = vpop.f32.mrf.mxu1  ;;  %v2142_v30 = vpop.f32.mrf.mxu0  ;;  %v1492_v60 = vadd.f32 %v1463_v54, %v1405_v2  ;;  %v1348_v33 = vsel %vm3525_vm5, %v3717_v27, %v1315_v26  ;;  %v1700_v44 = vadd.f32 %v1699_v5, %v1638_v45  ;;  %v1284_v10 = vmin.f32 %v3738_v49, %v1041_v58  ;;  %v1438_v26 = vld [vmem:[#allocation7 + $0x80] sm:$0xff] }
 0x1af   :  { %v1192_v55 = vsel %vm3508_vm2, %v1160_v4, %v1130_v57  ;;  %v1406_v3 = vmul.f32 %v1377_v15, %v1348_v33  ;;  %v1639_v14 = vadd.f32 %v1610_v47, %v1551_v48  ;;  %v1552_v35 = vmul.f32 %v1986_v62, %v1348_v33  ;;  %v1585_v33 = vld [vmem:[#allocation7 + $0x168] sm:$0xff] }
 0x1b0   :  { %v1046_v61 = vpop.f32.mrf.mxu1  ;;  %v3822_v13 = vpop.f32.mrf.mxu0  ;;  %v1254_v27 = vsel %vm3515_vm3, %v1222_v0, %v1192_v55  ;;  %v1465_v51 = vmul.f32 %v1436_v19, %v1041_v58  ;;  %v1667_v32 = vadd.f32 %v1666_v7, %v1492_v60  ;;  %v1612_v40 = vmul.f32 %v1583_v46, %v1041_v58  ;;  %v1988_v0 = vld [vmem:[%s4240_s10 + $0x160] sm:$0xff] }
 0x1b1   :  { %v1131_v28 = vadd.f32 %v1046_v61, %v3759_v17  ;;  %v1161_v29 = vmul.f32 %v1046_v61, %v3759_v17  ;;  %v1223_v31 = vmax.f32 %v3759_v17, %v1046_v61  ;;  %v1316_v24 = vsel %vm3519_vm4, %v1284_v10, %v1254_v27  ;;  %v1380_v55 = vld [vmem:[%s4240_s10 + $0x80] sm:$0xff] }
 0x1b2   :  { %v2229_v20 = vpop.f32.mrf.mxu1  ;;  %v2145_v39 = vpop.f32.mrf.mxu0  ;;  %v1349_v52 = vsel %vm3525_vm5, %v3738_v49, %v1316_v24  ;;  %v1493_v54 = vadd.f32 %v1464_v22, %v1406_v3  ;;  %v1285_v63 = vmin.f32 %v3759_v17, %v1046_v61  ;;  %v1379_v49 = vld [vmem:[%s4240_s10 + $0x78] sm:$0xff]  ;;  %v1701_v2 = vadd.f32 %v1700_v44, %v1639_v14 }
 0x1b3   :  { %v1193_v37 = vsel %vm3508_vm2, %v1161_v29, %v1131_v28  ;;  %v1407_v53 = vmul.f32 %v1378_v36, %v1349_v52  ;;  %v1553_v41 = vmul.f32 %v1987_v21, %v1349_v52  ;;  %v1640_v50 = vadd.f32 %v1611_v59, %v1552_v35  ;;  %v1989_v29 = vld [vmem:[%s4240_s10 + $0x168] sm:$0xff] }
 0x1b4   :  { %v1051_v42 = vpop.f32.mrf.mxu1  ;;  %v3843_v47 = vpop.f32.mrf.mxu0  ;;  %v1255_v25 = vsel %vm3515_vm3, %v1223_v31, %v1193_v37  ;;  %v1466_v58 = vmul.f32 %v1437_v11, %v1046_v61  ;;  %v1613_v5 = vmul.f32 %v1584_v9, %v1046_v61  ;;  %v1668_v22 = vadd.f32 %v1667_v32, %v1493_v54  ;;  %v1439_v35 = vld [vmem:[#allocation7 + $0x88] sm:$0xff]  ;;  %v1586_v32 = vld [vmem:[#allocation7 + $0x170] sm:$0xff] }
 0x1b5   :  { %v1132_v38 = vadd.f32 %v1051_v42, %v3780_v43  ;;  %v1162_v23 = vmul.f32 %v1051_v42, %v3780_v43  ;;  %v1224_v45 = vmax.f32 %v3780_v43, %v1051_v42  ;;  %v1317_v6 = vsel %vm3519_vm4, %v1285_v63, %v1255_v25  ;;  %v1381_v37 = vld [vmem:[%s4240_s10 + $0x88] sm:$0xff]  ;;  %v1990_v11 = vld [vmem:[%s4240_s10 + $0x170] sm:$0xff] }
 0x1b6   :  { %v2232_v1 = vpop.f32.mrf.mxu1  ;;  %v2148_v15 = vpop.f32.mrf.mxu0  ;;  %v1494_v57 = vadd.f32 %v1465_v51, %v1407_v53  ;;  %v1350_v4 = vsel %vm3525_vm5, %v3759_v17, %v1317_v6  ;;  %v1641_v8 = vadd.f32 %v1612_v40, %v1553_v41  ;;  %v1286_v60 = vmin.f32 %v3780_v43, %v1051_v42  ;;  %v1440_v6 = vld [vmem:[#allocation7 + $0x90] sm:$0xff] }
 0x1b7   :  { %v1194_v48 = vsel %vm3508_vm2, %v1162_v23, %v1132_v38  ;;  %v1408_v30 = vmul.f32 %v1379_v49, %v1350_v4  ;;  %v1702_v3 = vadd.f32 %v1701_v2, %v1640_v50  ;;  %v1554_v10 = vmul.f32 %v1988_v0, %v1350_v4  ;;  %v1587_v4 = vld [vmem:[#allocation7 + $0x178] sm:$0xff] }
 0x1b8   :  { %v1056_v62 = vpop.f32.mrf.mxu1  ;;  %v3864_v59 = vpop.f32.mrf.mxu0  ;;  %v1256_v17 = vsel %vm3515_vm3, %v1224_v45, %v1194_v48  ;;  %v1467_v61 = vmul.f32 %v1438_v26, %v1051_v42  ;;  %v1669_v21 = vadd.f32 %v1668_v22, %v1494_v57  ;;  %v1614_v31 = vmul.f32 %v1585_v33, %v1051_v42 }
 0x1b9   :  { %v1133_v19 = vadd.f32 %v1056_v62, %v3801_v12  ;;  %v1163_v7 = vmul.f32 %v1056_v62, %v3801_v12  ;;  %v1225_v44 = vmax.f32 %v3801_v12, %v1056_v62  ;;  %v1318_v46 = vsel %vm3519_vm4, %v1286_v60, %v1256_v17 }
 0x1ba   :  { %v2235_v27 = vpop.f32.mrf.mxu1  ;;  %v2151_v36 = vpop.f32.mrf.mxu0  ;;  %v1351_v28 = vsel %vm3525_vm5, %v3780_v43, %v1318_v46  ;;  %v1703_v24 = vadd.f32 %v1702_v3, %v1641_v8  ;;  %v1495_v51 = vadd.f32 %v1466_v58, %v1408_v30  ;;  %v1287_v39 = vmin.f32 %v3801_v12, %v1056_v62  ;;  %v1441_v46 = vld [vmem:[#allocation7 + $0x98] sm:$0xff] }
 0x1bb   :  { %v1195_v14 = vsel %vm3508_vm2, %v1163_v7, %v1133_v19  ;;  %v1409_v20 = vmul.f32 %v1380_v55, %v1351_v28  ;;  %v1642_v63 = vadd.f32 %v1613_v5, %v1554_v10  ;;  %v1555_v9 = vmul.f32 %v1989_v29, %v1351_v28  ;;  %v1588_v28 = vld [vmem:[#allocation7 + $0x180] sm:$0xff] }
 0x1bc   :  { %v1061_v52 = vpop.f32.mrf.mxu1  ;;  %v3885_v40 = vpop.f32.mrf.mxu0  ;;  %v1257_v43 = vsel %vm3515_vm3, %v1225_v44, %v1195_v14  ;;  %v1468_v25 = vmul.f32 %v1439_v35, %v1056_v62  ;;  %v1615_v2 = vmul.f32 %v1586_v32, %v1056_v62  ;;  %v1670_v58 = vadd.f32 %v1669_v21, %v1495_v51  ;;  %v1991_v44 = vld [vmem:[%s4240_s10 + $0x178] sm:$0xff] }
 0x1bd   :  { %v1134_v54 = vadd.f32 %v1061_v52, %v3822_v13  ;;  %v1164_v53 = vmul.f32 %v1061_v52, %v3822_v13  ;;  %v1226_v41 = vmax.f32 %v3822_v13, %v1061_v52  ;;  %v1319_v42 = vsel %vm3519_vm4, %v1287_v39, %v1257_v43  ;;  %v1383_v14 = vld [vmem:[%s4240_s10 + $0x98] sm:$0xff] }
 0x1be   :  { %v2238_v49 = vpop.f32.mrf.mxu1  ;;  %v2154_v38 = vpop.f32.mrf.mxu0  ;;  %v1496_v23 = vadd.f32 %v1467_v61, %v1409_v20  ;;  %v1352_v45 = vsel %vm3525_vm5, %v3801_v12, %v1319_v42  ;;  %v1288_v57 = vmin.f32 %v3822_v13, %v1061_v52  ;;  %v1382_v12 = vld [vmem:[%s4240_s10 + $0x90] sm:$0xff]  ;;  %v1704_v30 = vadd.f32 %v1703_v24, %v1642_v63 }
 0x1bf   :  { %v1196_v50 = vsel %vm3508_vm2, %v1164_v53, %v1134_v54  ;;  %v1410_v1 = vmul.f32 %v1381_v37, %v1352_v45  ;;  %v1556_v15 = vmul.f32 %v1990_v11, %v1352_v45  ;;  %v1643_v60 = vadd.f32 %v1614_v31, %v1555_v9  ;;  %v1992_v53 = vld [vmem:[%s4240_s10 + $0x180] sm:$0xff] }
 0x1c0   :  { %v1066_v0 = vpop.f32.mrf.mxu1  ;;  %v3906_v5 = vpop.f32.mrf.mxu0  ;;  %v1258_v48 = vsel %vm3515_vm3, %v1226_v41, %v1196_v50  ;;  %v1469_v62 = vmul.f32 %v1440_v6, %v1061_v52  ;;  %v1671_v19 = vadd.f32 %v1670_v58, %v1496_v23  ;;  %v1616_v3 = vmul.f32 %v1587_v4, %v1061_v52  ;;  %v1442_v9 = vld [vmem:[#allocation7 + $0xa0] sm:$0xff]  ;;  %v1589_v23 = vld [vmem:[#allocation7 + $0x188] sm:$0xff] }
 0x1c1   :  { %v1135_v26 = vadd.f32 %v1066_v0, %v3843_v47  ;;  %v1165_v22 = vmul.f32 %v1066_v0, %v3843_v47  ;;  %v1227_v8 = vmax.f32 %v3843_v47, %v1066_v0  ;;  %v1320_v33 = vsel %vm3519_vm4, %v1288_v57, %v1258_v48  ;;  %v1384_v50 = vld [vmem:[%s4240_s10 + $0xa0] sm:$0xff]  ;;  %v1993_v6 = vld [vmem:[%s4240_s10 + $0x188] sm:$0xff] }
 0x1c2   :  { %v2241_v17 = vpop.f32.mrf.mxu1  ;;  %v2157_v55 = vpop.f32.mrf.mxu0  ;;  %v1353_v7 = vsel %vm3525_vm5, %v3822_v13, %v1320_v33  ;;  %v1497_v61 = vadd.f32 %v1468_v25, %v1410_v1  ;;  %v1644_v27 = vadd.f32 %v1615_v2, %v1556_v15  ;;  %v1289_v21 = vmin.f32 %v3843_v47, %v1066_v0  ;;  %v1443_v33 = vld [vmem:[#allocation7 + $0xa8] sm:$0xff] }
 0x1c3   :  { %v1197_v10 = vsel %vm3508_vm2, %v1165_v22, %v1135_v26  ;;  %v1411_v36 = vmul.f32 %v1382_v12, %v1353_v7  ;;  %v1705_v20 = vadd.f32 %v1704_v30, %v1643_v60  ;;  %v1557_v39 = vmul.f32 %v1991_v44, %v1353_v7  ;;  %v1590_v7 = vld [vmem:[#allocation7 + $0x190] sm:$0xff] }
 0x1c4   :  { %v1071_v29 = vpop.f32.mrf.mxu1  ;;  %v3927_v31 = vpop.f32.mrf.mxu0  ;;  %v1259_v13 = vsel %vm3515_vm3, %v1227_v8, %v1197_v10  ;;  %v1470_v52 = vmul.f32 %v1441_v46, %v1066_v0  ;;  %v1617_v41 = vmul.f32 %v1588_v28, %v1066_v0  ;;  %v1672_v42 = vadd.f32 %v1671_v19, %v1497_v61 }
 0x1c5   :  { %v1136_v35 = vadd.f32 %v1071_v29, %v3864_v59  ;;  %v1166_v24 = vmul.f32 %v1071_v29, %v3864_v59  ;;  %v1228_v51 = vmax.f32 %v3864_v59, %v1071_v29  ;;  %v1321_v32 = vsel %vm3519_vm4, %v1289_v21, %v1259_v13 }
 0x1c6   :  { %v2244_v43 = vpop.f32.mrf.mxu1  ;;  %v2160_v37 = vpop.f32.mrf.mxu0  ;;  %v1498_v11 = vadd.f32 %v1469_v62, %v1411_v36  ;;  %v1354_v54 = vsel %vm3525_vm5, %v3843_v47, %v1321_v32  ;;  %v1706_v25 = vadd.f32 %v1705_v20, %v1644_v27  ;;  %v1290_v38 = vmin.f32 %v3864_v59, %v1071_v29  ;;  %v1444_v32 = vld [vmem:[#allocation7 + $0xb0] sm:$0xff] }
 0x1c7   :  { %v1198_v63 = vsel %vm3508_vm2, %v1166_v24, %v1136_v35  ;;  %v1412_v49 = vmul.f32 %v1383_v14, %v1354_v54  ;;  %v1645_v57 = vadd.f32 %v1616_v3, %v1557_v39  ;;  %v1558_v4 = vmul.f32 %v1992_v53, %v1354_v54  ;;  %v1591_v54 = vld [vmem:[#allocation7 + $0x198] sm:$0xff] }
 0x1c8   :  { %v1076_v45 = vpop.f32.mrf.mxu1  ;;  %v3948_v2 = vpop.f32.mrf.mxu0  ;;  %v1260_v47 = vsel %vm3515_vm3, %v1228_v51, %v1198_v63  ;;  %v1471_v48 = vmul.f32 %v1442_v9, %v1071_v29  ;;  %v1673_v22 = vadd.f32 %v1672_v42, %v1498_v11  ;;  %v1618_v30 = vmul.f32 %v1589_v23, %v1071_v29  ;;  %v1994_v51 = vld [vmem:[%s4240_s10 + $0x190] sm:$0xff] }
 0x1c9   :  { %v1137_v58 = vadd.f32 %v1076_v45, %v3885_v40  ;;  %v1167_v1 = vmul.f32 %v1076_v45, %v3885_v40  ;;  %v1229_v15 = vmax.f32 %v3885_v40, %v1076_v45  ;;  %v1322_v0 = vsel %vm3519_vm4, %v1290_v38, %v1260_v47  ;;  %v1386_v63 = vld [vmem:[%s4240_s10 + $0xb0] sm:$0xff] }
 0x1ca   :  { %v2247_v12 = vpop.f32.mrf.mxu1  ;;  %v2163_v26 = vpop.f32.mrf.mxu0  ;;  %v1355_v8 = vsel %vm3525_vm5, %v3864_v59, %v1322_v0  ;;  %v1499_v62 = vadd.f32 %v1470_v52, %v1412_v49  ;;  %v1291_v19 = vmin.f32 %v3885_v40, %v1076_v45  ;;  %v1385_v59 = vld [vmem:[%s4240_s10 + $0xa8] sm:$0xff]  ;;  %v1707_v36 = vadd.f32 %v1706_v25, %v1645_v57 }
 0x1cb   :  { %v1199_v60 = vsel %vm3508_vm2, %v1167_v1, %v1137_v58  ;;  %v1413_v17 = vmul.f32 %v1384_v50, %v1355_v8  ;;  %v1559_v55 = vmul.f32 %v1993_v6, %v1355_v8  ;;  %v1646_v21 = vadd.f32 %v1617_v41, %v1558_v4  ;;  %v1995_v1 = vld [vmem:[%s4240_s10 + $0x198] sm:$0xff] }
 0x1cc   :  { %v1081_v44 = vpop.f32.mrf.mxu1  ;;  %v3969_v3 = vpop.f32.mrf.mxu0  ;;  %v1261_v10 = vsel %vm3515_vm3, %v1229_v15, %v1199_v60  ;;  %v1472_v29 = vmul.f32 %v1443_v33, %v1076_v45  ;;  %v1619_v20 = vmul.f32 %v1590_v7, %v1076_v45  ;;  %v1674_v52 = vadd.f32 %v1673_v22, %v1499_v62  ;;  %v1445_v4 = vld [vmem:[#allocation7 + $0xb8] sm:$0xff]  ;;  %v1592_v22 = vld [vmem:[#allocation7 + $0x1a0] sm:$0xff] }
 0x1cd   :  { %v1138_v46 = vadd.f32 %v1081_v44, %v3906_v5  ;;  %v1168_v61 = vmul.f32 %v1081_v44, %v3906_v5  ;;  %v1230_v27 = vmax.f32 %v3906_v5, %v1081_v44  ;;  %v1323_v28 = vsel %vm3519_vm4, %v1291_v19, %v1261_v10  ;;  %v1387_v60 = vld [vmem:[%s4240_s10 + $0xb8] sm:$0xff]  ;;  %v1996_v33 = vld [vmem:[%s4240_s10 + $0x1a0] sm:$0xff] }
 0x1ce   :  { %v2250_v13 = vpop.f32.mrf.mxu1  ;;  %v2166_v14 = vpop.f32.mrf.mxu0  ;;  %v1500_v35 = vadd.f32 %v1471_v48, %v1413_v17  ;;  %v1356_v24 = vsel %vm3525_vm5, %v3885_v40, %v1323_v28  ;;  %v1647_v43 = vadd.f32 %v1618_v30, %v1559_v55  ;;  %v1292_v11 = vmin.f32 %v3906_v5, %v1081_v44  ;;  %v1446_v28 = vld [vmem:[#allocation7 + $0xc0] sm:$0xff] }
 0x1cf   :  { %v1200_v39 = vsel %vm3508_vm2, %v1168_v61, %v1138_v46  ;;  %v1414_v37 = vmul.f32 %v1385_v59, %v1356_v24  ;;  %v1708_v49 = vadd.f32 %v1707_v36, %v1646_v21  ;;  %v1560_v38 = vmul.f32 %v1994_v51, %v1356_v24  ;;  %v1593_v24 = vld [vmem:[#allocation7 + $0x1a8] sm:$0xff] }
 0x1d0   :  { %v1086_v53 = vpop.f32.mrf.mxu1  ;;  %v3990_v41 = vpop.f32.mrf.mxu0  ;;  %v1262_v40 = vsel %vm3515_vm3, %v1230_v27, %v1200_v39  ;;  %v1473_v45 = vmul.f32 %v1444_v32, %v1081_v44  ;;  %v1675_v6 = vadd.f32 %v1674_v52, %v1500_v35  ;;  %v1620_v15 = vmul.f32 %v1591_v54, %v1081_v44 }
 0x1d1   :  { %v1139_v9 = vadd.f32 %v1086_v53, %v3927_v31  ;;  %v1169_v42 = vmul.f32 %v1086_v53, %v3927_v31  ;;  %v1231_v25 = vmax.f32 %v3927_v31, %v1086_v53  ;;  %v1324_v23 = vsel %vm3519_vm4, %v1292_v11, %v1262_v40 }
 0x1d2   :  { %v2253_v47 = vpop.f32.mrf.mxu1  ;;  %v2169_v50 = vpop.f32.mrf.mxu0  ;;  %v1357_v58 = vsel %vm3525_vm5, %v3906_v5, %v1324_v23  ;;  %v1709_v0 = vadd.f32 %v1708_v49, %v1647_v43  ;;  %v1501_v48 = vadd.f32 %v1472_v29, %v1414_v37  ;;  %v1293_v26 = vmin.f32 %v3927_v31, %v1086_v53  ;;  %v1447_v23 = vld [vmem:[#allocation7 + $0xc8] sm:$0xff] }
 0x1d3   :  { %v1201_v57 = vsel %vm3508_vm2, %v1169_v42, %v1139_v9  ;;  %v1415_v12 = vmul.f32 %v1386_v63, %v1357_v58  ;;  %v1648_v19 = vadd.f32 %v1619_v20, %v1560_v38  ;;  %v1561_v7 = vmul.f32 %v1995_v1, %v1357_v58  ;;  %v1594_v58 = vld [vmem:[#allocation7 + $0x1b0] sm:$0xff] }
 0x1d4   :  { %v1091_v8 = vpop.f32.mrf.mxu1  ;;  %v4011_v30 = vpop.f32.mrf.mxu0  ;;  %v1263_v5 = vsel %vm3515_vm3, %v1231_v25, %v1201_v57  ;;  %v1474_v10 = vmul.f32 %v1445_v4, %v1086_v53  ;;  %v1621_v36 = vmul.f32 %v1592_v22, %v1086_v53  ;;  %v1676_v29 = vadd.f32 %v1675_v6, %v1501_v48  ;;  %v1997_v25 = vld [vmem:[%s4240_s10 + $0x1a8] sm:$0xff] }
 0x1d5   :  { %v1140_v62 = vadd.f32 %v1091_v8, %v3948_v2  ;;  %v1170_v17 = vmul.f32 %v1091_v8, %v3948_v2  ;;  %v1232_v55 = vmax.f32 %v3948_v2, %v1091_v8  ;;  %v1325_v44 = vsel %vm3519_vm4, %v1293_v26, %v1263_v5 }
 0x1d6   :  { %v2256_v59 = vpop.f32.mrf.mxu1  ;;  %v2172_v46 = vpop.f32.mrf.mxu0  ;;  %v1502_v61 = vadd.f32 %v1473_v45, %v1415_v12  ;;  %v1358_v27 = vsel %vm3525_vm5, %v3927_v31, %v1325_v44  ;;  %v1294_v35 = vmin.f32 %v3948_v2, %v1091_v8  ;;  %v1388_v31 = vld [vmem:[%s4240_s10 + $0xc0] sm:$0xff]  ;;  %v1710_v37 = vadd.f32 %v1709_v0, %v1648_v19 }
 0x1d7   :  { %v1202_v21 = vsel %vm3508_vm2, %v1170_v17, %v1140_v62  ;;  %v1416_v13 = vmul.f32 %v1387_v60, %v1358_v27  ;;  %v1562_v14 = vmul.f32 %v1996_v33, %v1358_v27  ;;  %v1649_v11 = vadd.f32 %v1620_v15, %v1561_v7  ;;  %v1998_v33 = vld [vmem:[%s4240_s10 + $0x1b0] sm:$0xff]  ;;  %v1595_v59 = vld [vmem:[#allocation7 + $0x1b8] sm:$0xff] }
 0x1d8   :  { %v1096_v51 = vpop.f32.mrf.mxu1  ;;  %v4032_v20 = vpop.f32.mrf.mxu0  ;;  %v1264_v39 = vsel %vm3515_vm3, %v1232_v55, %v1202_v21  ;;  %v1475_v53 = vmul.f32 %v1446_v28, %v1091_v8  ;;  %v1677_v9 = vadd.f32 %v1676_v29, %v1502_v61  ;;  %v1622_v49 = vmul.f32 %v1593_v24, %v1091_v8  ;;  %v1448_v55 = vld [vmem:[#allocation7 + $0xd0] sm:$0xff]  ;;  %v1999_v27 = vld [vmem:[%s4240_s10 + $0x1b8] sm:$0xff] }
 0x1d9   :  { %v1141_v32 = vadd.f32 %v1096_v51, %v3969_v3  ;;  %v1171_v52 = vmul.f32 %v1096_v51, %v3969_v3  ;;  %v1233_v43 = vmax.f32 %v3969_v3, %v1096_v51  ;;  %v1326_v54 = vsel %vm3519_vm4, %v1294_v35, %v1264_v39 }
 0x1da   :  { %v2259_v40 = vpop.f32.mrf.mxu1  ;;  %v2175_v63 = vpop.f32.mrf.mxu0  ;;  %v1359_v42 = vsel %vm3525_vm5, %v3948_v2, %v1326_v54  ;;  %v1503_v45 = vadd.f32 %v1474_v10, %v1416_v13  ;;  %v1650_v47 = vadd.f32 %v1621_v36, %v1562_v14  ;;  %v1295_v6 = vmin.f32 %v3969_v3, %v1096_v51  ;;  %v1389_v2 = vld [vmem:[%s4240_s10 + $0xc8] sm:$0xff] }
 0x1db   :  { %v1203_v38 = vsel %vm3508_vm2, %v1171_v52, %v1141_v32  ;;  %v1417_v50 = vmul.f32 %v1388_v31, %v1359_v42  ;;  %v1711_v48 = vadd.f32 %v1710_v37, %v1649_v11  ;;  %v1563_v12 = vmul.f32 %v1997_v25, %v1359_v42  ;;  %v1449_v52 = vld [vmem:[#allocation7 + $0xd8] sm:$0xff] }
 0x1dc   :  { %v1101_v1 = vpop.f32.mrf.mxu1  ;;  %v1265_v15 = vsel %vm3515_vm3, %v1233_v43, %v1203_v38  ;;  %v1476_v22 = vmul.f32 %v1447_v23, %v1096_v51  ;;  %v1623_v62 = vmul.f32 %v1594_v58, %v1096_v51  ;;  %v1678_v19 = vadd.f32 %v1677_v9, %v1503_v45  ;;  %v1391_v9 = vld [vmem:[%s4240_s10 + $0xd8] sm:$0xff] }
 0x1dd   :  { %v1142_v57 = vadd.f32 %v1101_v1, %v3990_v41  ;;  %v1172_v4 = vmul.f32 %v1101_v1, %v3990_v41  ;;  %v1234_v0 = vmax.f32 %v3990_v41, %v1101_v1  ;;  %v1327_v26 = vsel %vm3519_vm4, %v1295_v6, %v1265_v15 }
 0x1de   :  { %v2262_v8 = vpop.f32.mrf.mxu1  ;;  %v1504_v5 = vadd.f32 %v1475_v53, %v1417_v50  ;;  %v1360_v60 = vsel %vm3525_vm5, %v3969_v3, %v1327_v26  ;;  %v1712_v7 = vadd.f32 %v1711_v48, %v1650_v47  ;;  %v1296_v10 = vmin.f32 %v3990_v41, %v1101_v1  ;;  %v1390_v3 = vld [vmem:[%s4240_s10 + $0xd0] sm:$0xff]  ;;  %v1596_v53 = vld [vmem:[#allocation7 + $0x1c0] sm:$0xff] }
 0x1df   :  { %v1204_v17 = vsel %vm3508_vm2, %v1172_v4, %v1142_v57  ;;  %v1418_v44 = vmul.f32 %v1389_v2, %v1360_v60  ;;  %v1651_v29 = vadd.f32 %v1622_v49, %v1563_v12  ;;  %v1564_v13 = vmul.f32 %v1998_v33, %v1360_v60  ;;  %v1450_v48 = vld [vmem:[#allocation7 + $0xe0] sm:$0xff]  ;;  %v1597_v12 = vld [vmem:[#allocation7 + $0x1c8] sm:$0xff] }
 0x1e0   :  { %v1106_v46 = vpop.f32.mrf.mxu1  ;;  %v1266_v61 = vsel %vm3515_vm3, %v1234_v0, %v1204_v17  ;;  %v1477_v35 = vmul.f32 %v1448_v55, %v1101_v1  ;;  %v1679_v51 = vadd.f32 %v1678_v19, %v1504_v5  ;;  %v1624_v31 = vmul.f32 %v1595_v59, %v1101_v1  ;;  %v1392_v8 = vld [vmem:[%s4240_s10 + $0xe0] sm:$0xff] }
 0x1e1   :  { %v1143_v36 = vadd.f32 %v1106_v46, %v4011_v30  ;;  %v1173_v21 = vmul.f32 %v1106_v46, %v4011_v30  ;;  %v1235_v28 = vmax.f32 %v4011_v30, %v1106_v46  ;;  %v1328_v14 = vsel %vm3519_vm4, %v1296_v10, %v1266_v61 }
 0x1e2   :  { %v2265_v24 = vpop.f32.mrf.mxu1  ;;  %v1361_v39 = vsel %vm3525_vm5, %v3990_v41, %v1328_v14  ;;  %v1505_v43 = vadd.f32 %v1476_v22, %v1418_v44  ;;  %v1297_v54 = vmin.f32 %v4011_v30, %v1106_v46  ;;  %v2000_v41 = vld [vmem:[%s4240_s10 + $0x1c0] sm:$0xff]  ;;  %v1713_v38 = vadd.f32 %v1712_v7, %v1651_v29 }
 0x1e3   :  { %v1205_v32 = vsel %vm3508_vm2, %v1173_v21, %v1143_v36  ;;  %v1419_v37 = vmul.f32 %v1390_v3, %v1361_v39  ;;  %v1565_v11 = vmul.f32 %v1999_v27, %v1361_v39  ;;  %v1652_v23 = vadd.f32 %v1623_v62, %v1564_v13 }
 0x1e4   :  { %v1111_v40 = vpop.f32.mrf.mxu1  ;;  %v1267_v63 = vsel %vm3515_vm3, %v1235_v28, %v1205_v32  ;;  %v1478_v47 = vmul.f32 %v1449_v52, %v1106_v46  ;;  %v1625_v1 = vmul.f32 %v1596_v53, %v1106_v46  ;;  %v1680_v26 = vadd.f32 %v1679_v51, %v1505_v43 }
 0x1e5   :  { %v1144_v42 = vadd.f32 %v1111_v40, %v4032_v20  ;;  %v1174_v25 = vmul.f32 %v1111_v40, %v4032_v20  ;;  %v1236_v49 = vmax.f32 %v4032_v20, %v1111_v40  ;;  %v1329_v45 = vsel %vm3519_vm4, %v1297_v54, %v1267_v63 }
 0x1e6   :  { %v2268_v50 = vpop.f32.mrf.mxu1  ;;  %v1506_v6 = vadd.f32 %v1477_v35, %v1419_v37  ;;  %v1362_v58 = vsel %vm3525_vm5, %v4011_v30, %v1329_v45  ;;  %v1653_v2 = vadd.f32 %v1624_v31, %v1565_v11  ;;  %v1298_v0 = vmin.f32 %v4032_v20, %v1111_v40  ;;  %v1814_v31 = vld [vmem:[%s4241_s1] sm:$0x3] }
 0x1e7   :  { %v1206_v15 = vsel %vm3508_vm2, %v1174_v25, %v1144_v42  ;;  %v1420_v57 = vmul.f32 %v1391_v9, %v1362_v58  ;;  %v1566_v4 = vmul.f32 %v2000_v41, %v1362_v58  ;;  %v1714_v30 = vadd.f32 %v1713_v38, %v1652_v23  ;;  %v1817_v37 = vld [vmem:[%s4242_s7] sm:$0x3] }
 0x1e8   :  { %v1268_v22 = vsel %vm3515_vm3, %v1236_v49, %v1206_v15  ;;  %v1479_v34 = vmul.f32 %v1450_v48, %v1111_v40  ;;  %v1626_v17 = vmul.f32 %v1597_v12, %v1111_v40  ;;  %v1681_v55 = vadd.f32 %v1680_v26, %v1506_v6 }
 0x1e9   :  { %v1507_v5 = vadd.f32 %v1478_v47, %v1420_v57  ;;  %v1654_v60 = vadd.f32 %v1625_v1, %v1566_v4  ;;  %v1330_v33 = vsel %vm3519_vm4, %v1298_v0, %v1268_v22  ;;  %v1715_v19 = vadd.f32 %v1714_v30, %v1653_v2 }
 0x1ea   :  { %v1363_v62 = vsel %vm3525_vm5, %v4032_v20, %v1330_v33 }
 0x1eb   :  { %v1421_v7 = vmul.f32 %v1392_v8, %v1363_v62  ;;  %v1567_v44 = vmul.f32 %v2001_v56, %v1363_v62  ;;  %v1682_v10 = vadd.f32 %v1681_v55, %v1507_v5  ;;  %v1716_v59 = vadd.f32 %v1715_v19, %v1654_v60 }
 0x1ed   :  { %v1508_v46 = vadd.f32 %v1479_v34, %v1421_v7  ;;  %v1655_v61 = vadd.f32 %v1626_v17, %v1567_v44 }
 0x1ef   :  { %v1683_v3 = vadd.f32 %v1682_v10, %v1508_v46  ;;  %v1717_v27 = vadd.f32 %v1716_v59, %v1655_v61 }
 0x1f1   :  { %v1684_v36 = vrot.slane %v1683_v3, 4  ;;  %v1718_v21 = vrot.slane %v1717_v27, 4 }
 0x1f3   :  { %v1685_v18 = vadd.f32 %v1684_v36, %v1683_v3  ;;  %v1719_v28 = vadd.f32 %v1718_v21, %v1717_v27 }
 0x1f5   :  { %v1686_v29 = vrot.slane %v1685_v18, 2  ;;  %v1720_v13 = vrot.slane %v1719_v28, 2 }
 0x1f7   :  { %v1687_v16 = vadd.f32 %v1686_v29, %v1685_v18  ;;  %v1721_v20 = vadd.f32 %v1720_v13, %v1719_v28 }
 0x1f9   :  { %v1688_v14 = vrot.slane %v1687_v16, 1  ;;  %v1722_v35 = vrot.slane %v1721_v20, 1 }
 0x1fb   :  { %v1689_v24 = vadd.f32 %v1688_v14, %v1687_v16  ;;  %v1723_v51 = vadd.f32 %v1722_v35, %v1721_v20 }
 0x1fd   :  { %v1725_v39 = vsel %vm1724_vm6, %v1689_v24, %v1723_v51 }
 0x1fe   :  { %2302 = vmatmul.mubr.f32.vlgmr.msra.gmra.mxu0 %v1725_v39 }
 0x2be   :  { %v1808_v32 = vpop.f32.mrf.mxu0 }
 0x2bf   :  { %v1815_v52 = vsub.f32 %v1808_v32, %v1814_v31  ;;  %1813 = vst.msk [vmem:[#allocation8] sm:$0x3] %vm1812_vm7, %v1808_v32 }
 0x2c0   :  { %v2303_v43 = vpop.f32.mrf.mxu0 }
 0x2c1   :  { %v1816_v11 = vmul.f32 %v1815_v52, %v1815_v52 }
 0x2c3   :  { %v1818_v54 = vmul.f32 %v1817_v37, %v1816_v11 }
 0x2c5   :  { %v1819_v53 = vsel %vm1812_vm7, %v1818_v54, 0.0 }
 0x2c6   :  { %1820 = vadd.xlane.f32.xlu0 %v1819_v53 }
 0x2c7   :  { %2465 = shalt.err (!%p2462_p4)
}
 0x2c8   :  { %s4243_s6 = sld [smem:[#allocation44_spill]]  ;;  %s2509_s11 = smov [#allocation9]   ;;  %vm1833_vm8 = vcmask 0  }
 0x2c9   :  { %s1851_s17 = sshll.u32 %s2509_s11, 4  ;;  %s1852_s17 = int_to_ptr.vmem [resolvable:$true] %s1851_s17 }
 0x2ca   :  { %s2474_s20 = scalar_lea.vmem %s1852_s17, 16  ;;  %s2478_s22 = scalar_lea.vmem %s1852_s17, 32 }
 0x2cb   :  { %p2475_p5 = scmp.ne.s32.totalorder %s1852_s17, %s2474_s20  ;;  %p2479_p6 = scmp.lt.s32.totalorder %s1852_s17, %s1852_s17 }
 0x2cc   :  { %p2480_p7 = scmp.lt.s32.totalorder %s2478_s22, %s2474_s20 }
 0x2ce   :  { %1844 = dma.vmem_to_hbm [thread:$0]  %s1842_s9, 32, %s4243_s6, [#allocation5]  }
 0x2cf   :  { %p2481_p8 = por %p2480_p7, %p2479_p6 }
 0x2d1   :  { %p2482_p9 = pnand %p2481_p8, %p2475_p5 }
 0x34f   :  { %v1821_v40 = vpop.xlane.xlu0 %1820 }
 0x350   :  { %v1822_v63 = vrot.slane %v1821_v40, 4 }
 0x352   :  { %v1823_v9 = vadd.f32 %v1822_v63, %v1821_v40 }
 0x354   :  { %v1824_v41 = vrot.slane %v1823_v9, 2 }
 0x356   :  { %v1825_v42 = vadd.f32 %v1824_v41, %v1823_v9 }
 0x358   :  { %v1826_v25 = vrot.slane %v1825_v42, 1 }
 0x35a   :  { %v1827_v49 = vadd.f32 %v1826_v25, %v1825_v42 }
 0x35c   :  { %2304 = vpush %v1827_v49 }
 0x38d   :  { %s2305_s18 = spop %2304 }
 0x38e   :  { %s1831_s19 = smul.f32 0.125, %s2305_s18 }
 0x390   :  { %v1832_v38 = vstv %s1831_s19 }
 0x391   :  { %1834 = vst.msk [vmem:[#allocation9] sm:$0x1] %vm1833_vm8, %v1832_v38 }
 0x392   :  { %2485 = shalt.err (!%p2482_p9)
}
 0x393   :  { %s4244_s24 = sld [smem:[#allocation45_spill]] }
 0x399   :  { %1854 = dma.vmem_to_hbm [thread:$0]  %s1852_s17, 16, %s4244_s24, [#allocation10]  }
 0x39a   :  { %2498 = dma.done.wait [#allocation5], 32  }
 0x39b   :  { %2499 = vsyncadd [#allocation5], 4294967264 }
 0x39c   :  { %2500 = dma.done.wait [#allocation10], 16  }
 0x39d   :  { %2501 = vsyncadd [#allocation10], 4294967280 }
 0x39e   :  { %1861 = vsyncpa [#allocation4], 1 }
 0x39f   :  { %1862 = vsyncpa [#allocation5], 1 }
 0x3a0   :  { %1863 = vsyncpa [#allocation10], 1 }
 0x3a1   :  { %1864 = vsyncpa [#allocation6], 1 }

</bundles_post_ra>
